<compile_context>
chip_gen: v7x
topology: tpu7x:2x2x1
jax: 0.10.0
libtpu: 0.0.40
codegen_flags: <defaults>
</compile_context>

<pallas_src>
import functools

import jax
import jax.numpy as jnp
from jax.experimental import pallas as pl
from jax.experimental.pallas import tpu as pltpu

# Model hyper-parameters (small, but consistent with the hard-coded 32*32 flatten).
IN_FEATURES = 32 * 32              # 1024, forced by x.view(-1, 32*32)
ENC_LAYER_SIZES = [IN_FEATURES, 128]
LATENT_SIZE = 32
DEC_LAYER_SIZES = [128, IN_FEATURES]
PACK_WIDTH = 128                   # means(32) | log_var(32) | z(32) | pad(32)


def _round_up(n, m):
    return ((n + m - 1) // m) * m


def _vmem_limit_bytes():
    # 64 MiB on 128-MiB-VMEM chips (v5e/v6e); 32 MiB where physical VMEM is 64 MiB (v7x).
    try:
        cap = pltpu.get_tpu_info().vmem_capacity_bytes
    except Exception:
        cap = 128 * 1024 * 1024
    return min(64 * 1024 * 1024, cap // 2)


_VMEM_LIMIT = _vmem_limit_bytes()


def _choose_tb(b, block_b):
    """Batch tile: >=2 grid steps for large batches (v7x dual-TC), 16-row aligned."""
    tb = max(-(-b // 2), 1)          # ceil(b / 2)
    tb = _round_up(tb, 16)           # sublane pack for the bf16 matmul operands
    if tb > 256:
        tb = _round_up(tb, 256)      # full MXU rows for large tiles
    return min(tb, block_b)


def _cvae_kernel(x_ref, eps_ref,
                 ew0_ref, eb0_ref,
                 whead_ref, bhead_ref,
                 dw0_ref, db0_ref,
                 dw1_ref, db1_ref,
                 recon_ref, packed_ref):
    """One batch tile of the CVAE forward pass (weights stay VMEM-resident)."""
    # f32 HBM traffic, bf16 MXU operand (cast hidden under the input DMA).
    x = x_ref[...].astype(jnp.bfloat16)                          # (TB, 1024)

    # ---- Encoder MLP: Linear -> ReLU (bf16 MXU, fp32 accumulate) ----
    h = jnp.dot(x, ew0_ref[...], preferred_element_type=jnp.float32) + eb0_ref[...]
    h = jnp.maximum(h, 0.0)

    # ---- Fused means / log_var heads: single (128, 64) matmul, static split ----
    head = jnp.dot(h.astype(jnp.bfloat16), whead_ref[...],
                   preferred_element_type=jnp.float32) + bhead_ref[...]
    means = head[:, :LATENT_SIZE]
    log_var = head[:, LATENT_SIZE:]

    # ---- Reparameterization: z = eps * exp(0.5 * log_var) + means (fp32) ----
    std = jnp.exp(0.5 * log_var)
    z = eps_ref[...] * std + means

    # ---- Decoder MLP: Linear -> ReLU -> Linear -> Sigmoid ----
    d = jnp.dot(z.astype(jnp.bfloat16), dw0_ref[...],
                preferred_element_type=jnp.float32) + db0_ref[...]
    d = jnp.maximum(d, 0.0)
    logits = jnp.dot(d.astype(jnp.bfloat16), dw1_ref[...],
                     preferred_element_type=jnp.float32) + db1_ref[...]
    # Exact sigmoid via a single EUP transcendental (tanh); mul/add ride the VPU.
    recon = 0.5 * jnp.tanh(0.5 * logits) + 0.5
    recon_ref[...] = recon.astype(recon_ref.dtype)

    # ---- Lane-dense packed small outputs (one unmasked 128-wide store) ----
    packed_ref[...] = jnp.concatenate(
        [means, log_var, z, jnp.zeros_like(z)], axis=-1).astype(packed_ref.dtype)


def init_params(key):
    """Deterministic synthetic init mirroring nn.Linear shapes.

    Weights stored as (in, out) so the kernel computes x @ W + b (same math as
    PyTorch's x @ W.T + b with W of shape (out, in))."""
    def linear(k, fan_in, fan_out):
        k1, k2 = jax.random.split(k)
        bound = 1.0 / jnp.sqrt(jnp.float32(fan_in))
        w = jax.random.uniform(k1, (fan_in, fan_out), jnp.float32, -bound, bound)
        b = jax.random.uniform(k2, (1, fan_out), jnp.float32, -bound, bound)
        return w, b

    keys = jax.random.split(key, 5)
    ew0, eb0 = linear(keys[0], ENC_LAYER_SIZES[0], ENC_LAYER_SIZES[1])   # encoder L0
    wmu, bmu = linear(keys[1], ENC_LAYER_SIZES[1], LATENT_SIZE)          # linear_means
    wlv, blv = linear(keys[2], ENC_LAYER_SIZES[1], LATENT_SIZE)          # linear_log_var
    dw0, db0 = linear(keys[3], LATENT_SIZE, DEC_LAYER_SIZES[0])          # decoder L0
    dw1, db1 = linear(keys[4], DEC_LAYER_SIZES[0], DEC_LAYER_SIZES[1])   # decoder L1
    return (ew0, eb0, wmu, bmu, wlv, blv, dw0, db0, dw1, db1)


def prepare_params(params):
    """Fuse mu/log_var heads and cast matmul weights to bf16 (biases stay fp32).

    Call once outside the per-step path; `cvae_forward` takes the result."""
    ew0, eb0, wmu, bmu, wlv, blv, dw0, db0, dw1, db1 = params
    whead = jnp.concatenate([wmu, wlv], axis=1)                  # (128, 64)
    bhead = jnp.concatenate([bmu, blv], axis=1)                  # (1, 64)
    return (ew0.astype(jnp.bfloat16), eb0.astype(jnp.float32),
            whead.astype(jnp.bfloat16), bhead.astype(jnp.float32),
            dw0.astype(jnp.bfloat16), db0.astype(jnp.float32),
            dw1.astype(jnp.bfloat16), db1.astype(jnp.float32))


@functools.partial(jax.jit, static_argnames=("block_b",))
def cvae_forward(x, eps, kparams, block_b=1024):
    """Returns (recon_x, means, log_var, z), matching CVAE.forward (conditional=False)."""
    x2 = x.reshape(-1, IN_FEATURES).astype(jnp.float32)          # torch: x.view(-1, 32*32)
    b = x2.shape[0]
    assert eps.shape == (b, LATENT_SIZE), (eps.shape, (b, LATENT_SIZE))

    tb = _choose_tb(b, block_b)
    grid = (pl.cdiv(b, tb),)          # ragged last block handled (masked) by Pallas

    batch_spec = lambda n: pl.BlockSpec((tb, n), lambda i: (i, 0))
    resident = lambda arr: pl.BlockSpec(arr.shape, lambda i: (0, 0))  # VMEM-resident

    out_shape = (
        jax.ShapeDtypeStruct((b, IN_FEATURES), jnp.float32),     # recon_x
        jax.ShapeDtypeStruct((b, PACK_WIDTH), jnp.float32),      # means|log_var|z|pad
    )

    recon_x, packed = pl.pallas_call(
        _cvae_kernel,
        out_shape=out_shape,
        grid=grid,
        in_specs=[batch_spec(IN_FEATURES), batch_spec(LATENT_SIZE)]
                 + [resident(p) for p in kparams],
        out_specs=(batch_spec(IN_FEATURES), batch_spec(PACK_WIDTH)),
        compiler_params=pltpu.CompilerParams(
            dimension_semantics=("parallel",),      # v7x: shard batch over both TCs
            vmem_limit_bytes=_VMEM_LIMIT),
    )(x2, eps.astype(jnp.float32), *kparams)

    means = packed[:, 0:LATENT_SIZE]
    log_var = packed[:, LATENT_SIZE:2 * LATENT_SIZE]
    z = packed[:, 2 * LATENT_SIZE:3 * LATENT_SIZE]
    return recon_x, means, log_var, z


if __name__ == "__main__":
    key = jax.random.PRNGKey(0)
    k_x, k_eps, k_params = jax.random.split(key, 3)

    batch = 2
    # NCHW input, as the PyTorch module expects before view(-1, 32*32).
    x = jax.random.normal(k_x, (batch, 1, 32, 32), dtype=jnp.float32)
    # eps plays the role of torch.randn([batch_size, latent_size]).
    eps = jax.random.normal(k_eps, (batch, LATENT_SIZE), dtype=jnp.float32)

    params = init_params(k_params)
    kparams = prepare_params(params)     # head fusion + bf16 casts, done once

    recon_x, means, log_var, z = cvae_forward(x, eps, kparams)
    jax.block_until_ready((recon_x, means, log_var, z))

    assert recon_x.shape == (batch, IN_FEATURES)
    assert means.shape == (batch, LATENT_SIZE)
    assert log_var.shape == (batch, LATENT_SIZE)
    assert z.shape == (batch, LATENT_SIZE)
    assert bool(jnp.all(jnp.isfinite(recon_x)))
    assert bool(jnp.all(jnp.isfinite(means)))
    assert bool(jnp.all(jnp.isfinite(log_var)))
    assert bool(jnp.all(jnp.isfinite(z)))
    assert bool(jnp.all((recon_x >= 0.0) & (recon_x <= 1.0)))

    # Pure-JAX fp32 reference of the same forward pass (conditional=False).
    def ref_forward(x, eps, p):
        ew0, eb0, wmu, bmu, wlv, blv, dw0, db0, dw1, db1 = p
        x2 = x.reshape(-1, IN_FEATURES)
        h = jnp.maximum(x2 @ ew0 + eb0, 0.0)
        m = h @ wmu + bmu
        lv = h @ wlv + blv
        zz = eps * jnp.exp(0.5 * lv) + m
        d = jnp.maximum(zz @ dw0 + db0, 0.0)
        r = jax.nn.sigmoid(d @ dw1 + db1)
        return r, m, lv, zz

    r_ref, m_ref, lv_ref, z_ref = ref_forward(x, eps, params)
    # bf16 matmul operands -> generous tolerance vs. the fp32 reference.
    assert bool(jnp.max(jnp.abs(recon_x - r_ref)) < 5e-2)
    assert bool(jnp.max(jnp.abs(means - m_ref)) < 5e-2)
    assert bool(jnp.max(jnp.abs(log_var - lv_ref)) < 5e-2)
    assert bool(jnp.max(jnp.abs(z - z_ref)) < 5e-2)

    print("KERNEL_OK")
</pallas_src>

<mosaic_0001>
module attributes {stable_mosaic.version = 11 : i64} {
  func.func @_cvae_kernel(%arg0: i32, %arg1: memref<16x1024xf32, #tpu.memory_space<vmem>>, %arg2: memref<16x32xf32, #tpu.memory_space<vmem>>, %arg3: memref<1024x128xbf16, #tpu.memory_space<vmem>>, %arg4: memref<1x128xf32, #tpu.memory_space<vmem>>, %arg5: memref<128x64xbf16, #tpu.memory_space<vmem>>, %arg6: memref<1x64xf32, #tpu.memory_space<vmem>>, %arg7: memref<32x128xbf16, #tpu.memory_space<vmem>>, %arg8: memref<1x128xf32, #tpu.memory_space<vmem>>, %arg9: memref<128x1024xbf16, #tpu.memory_space<vmem>>, %arg10: memref<1x1024xf32, #tpu.memory_space<vmem>>, %arg11: memref<16x1024xf32, #tpu.memory_space<vmem>>, %arg12: memref<16x128xf32, #tpu.memory_space<vmem>>) attributes {dimension_semantics = [#tpu.dimension_semantics<parallel>], iteration_bounds = array<i64: 1>, scalar_prefetch = 0 : i64, scratch_operands = 0 : i64, tpu.core_type = #tpu.core_type<tc>, window_params = [{transform_indices = @transform_0, window_bounds = array<i64: 16, 1024>}, {transform_indices = @transform_1, window_bounds = array<i64: 16, 32>}, {pipeline_mode = #tpu.pipeline_mode<synchronous>, transform_indices = @transform_2, window_bounds = array<i64: 1024, 128>}, {pipeline_mode = #tpu.pipeline_mode<synchronous>, transform_indices = @transform_3, window_bounds = array<i64: 1, 128>}, {pipeline_mode = #tpu.pipeline_mode<synchronous>, transform_indices = @transform_4, window_bounds = array<i64: 128, 64>}, {pipeline_mode = #tpu.pipeline_mode<synchronous>, transform_indices = @transform_5, window_bounds = array<i64: 1, 64>}, {pipeline_mode = #tpu.pipeline_mode<synchronous>, transform_indices = @transform_6, window_bounds = array<i64: 32, 128>}, {pipeline_mode = #tpu.pipeline_mode<synchronous>, transform_indices = @transform_7, window_bounds = array<i64: 1, 128>}, {pipeline_mode = #tpu.pipeline_mode<synchronous>, transform_indices = @transform_8, window_bounds = array<i64: 128, 1024>}, {pipeline_mode = #tpu.pipeline_mode<synchronous>, transform_indices = @transform_9, window_bounds = array<i64: 1, 1024>}, {transform_indices = @transform_10, window_bounds = array<i64: 16, 1024>}, {transform_indices = @transform_11, window_bounds = array<i64: 16, 128>}]} {
    %c0 = arith.constant 0 : index
    %c0_0 = arith.constant 0 : index
    %0 = vector.load %arg1[%c0, %c0_0] : memref<16x1024xf32, #tpu.memory_space<vmem>>, vector<16x1024xf32>
    %1 = arith.truncf %0 : vector<16x1024xf32> to vector<16x1024xbf16>
    %c0_1 = arith.constant 0 : index
    %c0_2 = arith.constant 0 : index
    %2 = vector.load %arg3[%c0_1, %c0_2] : memref<1024x128xbf16, #tpu.memory_space<vmem>>, vector<1024x128xbf16>
    %cst = arith.constant dense<0.000000e+00> : vector<16x128xf32>
    %3 = tpu.matmul %1, %2, %cst {dimension_numbers = #tpu.dot_dimension_numbers<[1], [0], [0], [1], [0, 0, 1, 1], [], []>} : vector<16x1024xbf16>, vector<1024x128xbf16>, vector<16x128xf32> -> vector<16x128xf32>
    %c0_3 = arith.constant 0 : index
    %c0_4 = arith.constant 0 : index
    %4 = vector.load %arg4[%c0_3, %c0_4] : memref<1x128xf32, #tpu.memory_space<vmem>>, vector<1x128xf32>
    %5 = vector.broadcast %4 : vector<1x128xf32> to vector<16x128xf32>
    %6 = arith.addf %3, %5 : vector<16x128xf32>
    %cst_5 = arith.constant 0.000000e+00 : f32
    %7 = vector.broadcast %cst_5 : f32 to vector<16x128xf32>
    %8 = arith.maximumf %6, %7 : vector<16x128xf32>
    %9 = arith.truncf %8 : vector<16x128xf32> to vector<16x128xbf16>
    %c0_6 = arith.constant 0 : index
    %c0_7 = arith.constant 0 : index
    %10 = vector.load %arg5[%c0_6, %c0_7] : memref<128x64xbf16, #tpu.memory_space<vmem>>, vector<128x64xbf16>
    %cst_8 = arith.constant dense<0.000000e+00> : vector<16x64xf32>
    %11 = tpu.matmul %9, %10, %cst_8 {dimension_numbers = #tpu.dot_dimension_numbers<[1], [0], [0], [1], [0, 0, 1, 1], [], []>} : vector<16x128xbf16>, vector<128x64xbf16>, vector<16x64xf32> -> vector<16x64xf32>
    %c0_9 = arith.constant 0 : index
    %c0_10 = arith.constant 0 : index
    %12 = vector.load %arg6[%c0_9, %c0_10] : memref<1x64xf32, #tpu.memory_space<vmem>>, vector<1x64xf32>
    %13 = vector.broadcast %12 : vector<1x64xf32> to vector<16x64xf32>
    %14 = arith.addf %11, %13 : vector<16x64xf32>
    %15 = vector.extract_strided_slice %14 {offsets = [0, 0], sizes = [16, 32], strides = [1, 1]} : vector<16x64xf32> to vector<16x32xf32>
    %16 = vector.extract_strided_slice %14 {offsets = [0, 32], sizes = [16, 32], strides = [1, 1]} : vector<16x64xf32> to vector<16x32xf32>
    %cst_11 = arith.constant 5.000000e-01 : f32
    %17 = vector.broadcast %cst_11 : f32 to vector<16x32xf32>
    %18 = arith.mulf %17, %16 : vector<16x32xf32>
    %19 = math.exp %18 : vector<16x32xf32>
    %c0_12 = arith.constant 0 : index
    %c0_13 = arith.constant 0 : index
    %20 = vector.load %arg2[%c0_12, %c0_13] : memref<16x32xf32, #tpu.memory_space<vmem>>, vector<16x32xf32>
    %21 = arith.mulf %20, %19 : vector<16x32xf32>
    %22 = arith.addf %21, %15 : vector<16x32xf32>
    %23 = arith.truncf %22 : vector<16x32xf32> to vector<16x32xbf16>
    %c0_14 = arith.constant 0 : index
    %c0_15 = arith.constant 0 : index
    %24 = vector.load %arg7[%c0_14, %c0_15] : memref<32x128xbf16, #tpu.memory_space<vmem>>, vector<32x128xbf16>
    %cst_16 = arith.constant dense<0.000000e+00> : vector<16x128xf32>
    %25 = tpu.matmul %23, %24, %cst_16 {dimension_numbers = #tpu.dot_dimension_numbers<[1], [0], [0], [1], [0, 0, 1, 1], [], []>} : vector<16x32xbf16>, vector<32x128xbf16>, vector<16x128xf32> -> vector<16x128xf32>
    %c0_17 = arith.constant 0 : index
    %c0_18 = arith.constant 0 : index
    %26 = vector.load %arg8[%c0_17, %c0_18] : memref<1x128xf32, #tpu.memory_space<vmem>>, vector<1x128xf32>
    %27 = vector.broadcast %26 : vector<1x128xf32> to vector<16x128xf32>
    %28 = arith.addf %25, %27 : vector<16x128xf32>
    %cst_19 = arith.constant 0.000000e+00 : f32
    %29 = vector.broadcast %cst_19 : f32 to vector<16x128xf32>
    %30 = arith.maximumf %28, %29 : vector<16x128xf32>
    %31 = arith.truncf %30 : vector<16x128xf32> to vector<16x128xbf16>
    %c0_20 = arith.constant 0 : index
    %c0_21 = arith.constant 0 : index
    %32 = vector.load %arg9[%c0_20, %c0_21] : memref<128x1024xbf16, #tpu.memory_space<vmem>>, vector<128x1024xbf16>
    %cst_22 = arith.constant dense<0.000000e+00> : vector<16x1024xf32>
    %33 = tpu.matmul %31, %32, %cst_22 {dimension_numbers = #tpu.dot_dimension_numbers<[1], [0], [0], [1], [0, 0, 1, 1], [], []>} : vector<16x128xbf16>, vector<128x1024xbf16>, vector<16x1024xf32> -> vector<16x1024xf32>
    %c0_23 = arith.constant 0 : index
    %c0_24 = arith.constant 0 : index
    %34 = vector.load %arg10[%c0_23, %c0_24] : memref<1x1024xf32, #tpu.memory_space<vmem>>, vector<1x1024xf32>
    %35 = vector.broadcast %34 : vector<1x1024xf32> to vector<16x1024xf32>
    %36 = arith.addf %33, %35 : vector<16x1024xf32>
    %cst_25 = arith.constant 5.000000e-01 : f32
    %37 = vector.broadcast %cst_25 : f32 to vector<16x1024xf32>
    %38 = arith.mulf %37, %36 : vector<16x1024xf32>
    %39 = math.tanh %38 : vector<16x1024xf32>
    %cst_26 = arith.constant 5.000000e-01 : f32
    %40 = vector.broadcast %cst_26 : f32 to vector<16x1024xf32>
    %41 = arith.mulf %40, %39 : vector<16x1024xf32>
    %cst_27 = arith.constant 5.000000e-01 : f32
    %42 = vector.broadcast %cst_27 : f32 to vector<16x1024xf32>
    %43 = arith.addf %41, %42 : vector<16x1024xf32>
    %c0_28 = arith.constant 0 : index
    %c0_29 = arith.constant 0 : index
    %44 = vector.load %arg11[%c0_28, %c0_29] : memref<16x1024xf32, #tpu.memory_space<vmem>>, vector<16x1024xf32>
    tpu.vector_store %arg11[%c0_28, %c0_29], %43 {strides = array<i32>} : memref<16x1024xf32, #tpu.memory_space<vmem>>, vector<16x1024xf32>,
    %cst_30 = arith.constant 0.000000e+00 : f32
    %45 = vector.broadcast %cst_30 : f32 to vector<16x32xf32>
    %46 = tpu.concatenate %15, %16, %22, %45 in 1 : vector<16x32xf32>, vector<16x32xf32>, vector<16x32xf32>, vector<16x32xf32> -> vector<16x128xf32>
    %c0_31 = arith.constant 0 : index
    %c0_32 = arith.constant 0 : index
    %47 = vector.load %arg12[%c0_31, %c0_32] : memref<16x128xf32, #tpu.memory_space<vmem>>, vector<16x128xf32>
    tpu.vector_store %arg12[%c0_31, %c0_32], %46 {strides = array<i32>} : memref<16x128xf32, #tpu.memory_space<vmem>>, vector<16x128xf32>,
    return
  }
  func.func @transform_0(%arg0: i32) -> (i32, i32) {
    %c0_i32 = arith.constant 0 : i32
    %c0_i32_0 = arith.constant 0 : i32
    return %arg0, %c0_i32 : i32, i32
  }
  func.func @transform_1(%arg0: i32) -> (i32, i32) {
    %c0_i32 = arith.constant 0 : i32
    %c0_i32_0 = arith.constant 0 : i32
    return %arg0, %c0_i32 : i32, i32
  }
  func.func @transform_2(%arg0: i32) -> (i32, i32) {
    %c0_i32 = arith.constant 0 : i32
    %c0_i32_0 = arith.constant 0 : i32
    %c0_i32_1 = arith.constant 0 : i32
    return %c0_i32, %c0_i32_0 : i32, i32
  }
  func.func @transform_3(%arg0: i32) -> (i32, i32) {
    %c0_i32 = arith.constant 0 : i32
    %c0_i32_0 = arith.constant 0 : i32
    %c0_i32_1 = arith.constant 0 : i32
    return %c0_i32, %c0_i32_0 : i32, i32
  }
  func.func @transform_4(%arg0: i32) -> (i32, i32) {
    %c0_i32 = arith.constant 0 : i32
    %c0_i32_0 = arith.constant 0 : i32
    %c0_i32_1 = arith.constant 0 : i32
    return %c0_i32, %c0_i32_0 : i32, i32
  }
  func.func @transform_5(%arg0: i32) -> (i32, i32) {
    %c0_i32 = arith.constant 0 : i32
    %c0_i32_0 = arith.constant 0 : i32
    %c0_i32_1 = arith.constant 0 : i32
    return %c0_i32, %c0_i32_0 : i32, i32
  }
  func.func @transform_6(%arg0: i32) -> (i32, i32) {
    %c0_i32 = arith.constant 0 : i32
    %c0_i32_0 = arith.constant 0 : i32
    %c0_i32_1 = arith.constant 0 : i32
    return %c0_i32, %c0_i32_0 : i32, i32
  }
  func.func @transform_7(%arg0: i32) -> (i32, i32) {
    %c0_i32 = arith.constant 0 : i32
    %c0_i32_0 = arith.constant 0 : i32
    %c0_i32_1 = arith.constant 0 : i32
    return %c0_i32, %c0_i32_0 : i32, i32
  }
  func.func @transform_8(%arg0: i32) -> (i32, i32) {
    %c0_i32 = arith.constant 0 : i32
    %c0_i32_0 = arith.constant 0 : i32
    %c0_i32_1 = arith.constant 0 : i32
    return %c0_i32, %c0_i32_0 : i32, i32
  }
  func.func @transform_9(%arg0: i32) -> (i32, i32) {
    %c0_i32 = arith.constant 0 : i32
    %c0_i32_0 = arith.constant 0 : i32
    %c0_i32_1 = arith.constant 0 : i32
    return %c0_i32, %c0_i32_0 : i32, i32
  }
  func.func @transform_10(%arg0: i32) -> (i32, i32) {
    %c0_i32 = arith.constant 0 : i32
    %c0_i32_0 = arith.constant 0 : i32
    return %arg0, %c0_i32 : i32, i32
  }
  func.func @transform_11(%arg0: i32) -> (i32, i32) {
    %c0_i32 = arith.constant 0 : i32
    %c0_i32_0 = arith.constant 0 : i32
    return %arg0, %c0_i32 : i32, i32
  }
}

</mosaic_0001>

<bundles_post_ra>
// kernel: cvae_forward.1
= control target key start
LH: loop header
LB: loop body
LE: loop exit
PB: predicated region body
PF: predicated region fallthrough
CT: control target
= control target key end

     0   :  { %17 = vsyncpa [#allocation3], 0  ;;  %s3209_s0 = inlined_call_operand.hbm [shape: f32[2,1024], index: 0, kind: input, shape index: {}]   ;;  %s3210_s1 = inlined_call_operand.hbm [shape: f32[2,32], index: 1, kind: input, shape index: {}]   ;;  %s3211_s2 = inlined_call_operand.hbm [shape: bf16[1024,128], index: 2, kind: input, shape index: {}]   ;;  %s3212_s3 = inlined_call_operand.hbm [shape: f32[1,128], index: 3, kind: input, shape index: {}]   ;;  %s3213_s4 = inlined_call_operand.hbm [shape: bf16[128,64], index: 4, kind: input, shape index: {}]   ;;  %s3214_s5 = inlined_call_operand.hbm [shape: f32[1,64], index: 5, kind: input, shape index: {}]   ;;  %s3215_s6 = inlined_call_operand.hbm [shape: bf16[32,128], index: 6, kind: input, shape index: {}]   ;;  %s3216_s7 = inlined_call_operand.hbm [shape: f32[1,128], index: 7, kind: input, shape index: {}]   ;;  %s3217_s8 = inlined_call_operand.hbm [shape: bf16[128,1024], index: 8, kind: input, shape index: {}]   ;;  %s3218_s9 = inlined_call_operand.hbm [shape: f32[1,1024], index: 9, kind: input, shape index: {}]   ;;  %s3219_s10 = inlined_call_operand.hbm [shape: f32[2,1024], index: 10, kind: output, shape index: {0}]   ;;  %s3220_s11 = inlined_call_operand.hbm [shape: f32[2,128], index: 11, kind: output, shape index: {1}]  }
   0x1   :  { %18 = vsyncpa [#allocation6], 0 }
   0x2   :  { %19 = vsyncpa [#allocation9], 0 }
   0x3   :  { %20 = vsyncpa [#allocation12], 0 }
   0x4   :  { %21 = vsyncpa [#allocation15], 0 }
   0x5   :  { %22 = vsyncpa [#allocation18], 0 }
   0x6   :  { %23 = vsyncpa [#allocation4], 0 }
   0x7   :  { %24 = vsyncpa [#allocation21], 0 }
   0x8   :  { %29 = vsyncadd [#allocation3], 1792  ;;  %s2874_s17 = smov [#allocation2]   ;;  %s2594_s21 = scalar_lea.hbm %s3209_s0, 256 }
   0x9   :  { %s30_s18 = sshll.u32 %s2874_s17, 4  ;;  %p2595_p0 = scmp.ne.s32.totalorder %s3209_s0, %s2594_s21  ;;  %s31_s18 = int_to_ptr.vmem [resolvable:$true] %s30_s18 }
   0xa   :  { %p2598_p1 = scmp.lt.u32.totalorder %s2594_s21, %s3209_s0 }
   0xc   :  { %p2600_p2 = pnand %p2598_p1, %p2595_p0 }
   0xe   :  { %2603 = shalt.err (!%p2600_p2)
}
   0xf   :  { %s2604_s26 = scalar_lea.vmem %s31_s18, 256  ;;  %s2608_s27 = scalar_lea.vmem %s31_s18, 2048 }
  0x10   :  { %p2605_p3 = scmp.ne.s32.totalorder %s31_s18, %s2604_s26  ;;  %p2609_p4 = scmp.lt.s32.totalorder %s31_s18, %s31_s18 }
  0x11   :  { %p2610_p5 = scmp.lt.s32.totalorder %s2608_s27, %s2604_s26 }
  0x13   :  { %p2611_p6 = por %p2610_p5, %p2609_p4 }
  0x15   :  { %p2612_p7 = pnand %p2611_p6, %p2605_p3 }
  0x17   :  { %2615 = shalt.err (!%p2612_p7)
}
  0x18   :  { %s2875_s28 = smov 256   ;;  %s2876_s29 = smov 16  }
  0x19   :  { %36 = dma.hbm_to_vmem [thread:$0]  %s3209_s0, 256, %s31_s18, [#allocation3], %s2875_s28, %s2875_s28, %s2876_s29  }
  0x1a   :  { %41 = vsyncadd [#allocation6], 224  ;;  %s2877_s13 = smov [#allocation5]   ;;  %s2616_s17 = scalar_lea.hbm %s3210_s1, 32 }
  0x1b   :  { %s42_s14 = sshll.u32 %s2877_s13, 4  ;;  %p2617_p8 = scmp.ne.s32.totalorder %s3210_s1, %s2616_s17  ;;  %s43_s14 = int_to_ptr.vmem [resolvable:$true] %s42_s14 }
  0x1c   :  { %p2620_p9 = scmp.lt.u32.totalorder %s2616_s17, %s3210_s1 }
  0x1e   :  { %p2622_p10 = pnand %p2620_p9, %p2617_p8 }
  0x20   :  { %2625 = shalt.err (!%p2622_p10)
}
  0x21   :  { %s2626_s23 = scalar_lea.vmem %s43_s14, 32  ;;  %s2630_s0 = scalar_lea.vmem %s43_s14, 256 }
  0x22   :  { %p2627_p11 = scmp.ne.s32.totalorder %s43_s14, %s2626_s23  ;;  %p2631_p12 = scmp.lt.s32.totalorder %s43_s14, %s43_s14 }
  0x23   :  { %p2632_p13 = scmp.lt.s32.totalorder %s2630_s0, %s2626_s23 }
  0x25   :  { %p2633_p0 = por %p2632_p13, %p2631_p12 }
  0x27   :  { %p2634_p1 = pnand %p2633_p0, %p2627_p11 }
  0x29   :  { %2637 = shalt.err (!%p2634_p1)
}
  0x2a   :  { %s2878_s18 = smov 32   ;;  %s2879_s24 = smov 2  }
  0x2b   :  { %48 = dma.hbm_to_vmem [thread:$0]  %s3210_s1, 32, %s43_s14, [#allocation6], %s2878_s18, %s2878_s18, %s2879_s24  }
  0x2c   :  { %s2880_s27 = smov [#allocation8]   ;;  %s2881_s12 = smov [#allocation11]  }
  0x2d   :  { %s67_s30 = sshll.u32 %s2880_s27, 4  ;;  %s89_s13 = sshll.u32 %s2881_s12, 4  ;;  %s68_s30 = int_to_ptr.vmem [resolvable:$true] %s67_s30  ;;  %s90_s13 = int_to_ptr.vmem [resolvable:$true] %s89_s13 }
  0x2e   :  { %s2638_s17 = scalar_lea.hbm %s3212_s3, 16 }
  0x2f   :  { %p2639_p2 = scmp.ne.s32.totalorder %s3212_s3, %s2638_s17  ;;  %p2642_p3 = scmp.lt.u32.totalorder %s2638_s17, %s3212_s3 }
  0x31   :  { %p2644_p4 = pnand %p2642_p3, %p2639_p2 }
  0x33   :  { %2647 = shalt.err (!%p2644_p4)
}
  0x34   :  { %s2648_s1 = scalar_lea.vmem %s68_s30, 16  ;;  %s2652_s14 = scalar_lea.vmem %s68_s30, 32 }
  0x35   :  { %p2649_p5 = scmp.ne.s32.totalorder %s68_s30, %s2648_s1  ;;  %p2653_p6 = scmp.lt.s32.totalorder %s68_s30, %s68_s30 }
  0x36   :  { %p2654_p7 = scmp.lt.s32.totalorder %s2652_s14, %s2648_s1 }
  0x38   :  { %p2655_p8 = por %p2654_p7, %p2653_p6 }
  0x3a   :  { %p2656_p9 = pnand %p2655_p8, %p2649_p5 }
  0x3c   :  { %2659 = shalt.err (!%p2656_p9)
}
  0x3d   :  { %70 = dma.hbm_to_vmem [thread:$0]  %s3212_s3, 16, %s68_s30, [#allocation9]  }
  0x3e   :  { %s2660_s27 = scalar_lea.hbm %s3214_s5, 16 }
  0x3f   :  { %p2661_p10 = scmp.ne.s32.totalorder %s3214_s5, %s2660_s27  ;;  %p2664_p11 = scmp.lt.u32.totalorder %s2660_s27, %s3214_s5 }
  0x41   :  { %p2666_p12 = pnand %p2664_p11, %p2661_p10 }
  0x43   :  { %2669 = shalt.err (!%p2666_p12)
}
  0x44   :  { %s2670_s19 = scalar_lea.vmem %s90_s13, 16  ;;  %s2674_s20 = scalar_lea.vmem %s90_s13, 32 }
  0x45   :  { %p2671_p13 = scmp.ne.s32.totalorder %s90_s13, %s2670_s19  ;;  %p2675_p0 = scmp.lt.s32.totalorder %s90_s13, %s90_s13 }
  0x46   :  { %p2676_p1 = scmp.lt.s32.totalorder %s2674_s20, %s2670_s19 }
  0x48   :  { %p2677_p2 = por %p2676_p1, %p2675_p0 }
  0x4a   :  { %p2678_p3 = pnand %p2677_p2, %p2671_p13 }
  0x4c   :  { %2681 = shalt.err (!%p2678_p3)
}
  0x4d   :  { %92 = dma.hbm_to_vmem [thread:$0]  %s3214_s5, 16, %s90_s13, [#allocation12]  }
  0x4e   :  { %s2882_s21 = smov [#allocation14]   ;;  %s2883_s1 = smov [#allocation7]  }
  0x4f   :  { %s111_s22 = sshll.u32 %s2882_s21, 4  ;;  %s54_s14 = sshll.u32 %s2883_s1, 4  ;;  %s112_s22 = int_to_ptr.vmem [resolvable:$true] %s111_s22  ;;  %s55_s14 = int_to_ptr.vmem [resolvable:$true] %s54_s14 }
  0x50   :  { %s2682_s25 = scalar_lea.hbm %s3216_s7, 16 }
  0x51   :  { %p2683_p4 = scmp.ne.s32.totalorder %s3216_s7, %s2682_s25  ;;  %p2686_p5 = scmp.lt.u32.totalorder %s2682_s25, %s3216_s7 }
  0x53   :  { %p2688_p6 = pnand %p2686_p5, %p2683_p4 }
  0x55   :  { %2691 = shalt.err (!%p2688_p6)
}
  0x56   :  { %s2692_s5 = scalar_lea.vmem %s112_s22, 16  ;;  %s2696_s13 = scalar_lea.vmem %s112_s22, 32 }
  0x57   :  { %p2693_p7 = scmp.ne.s32.totalorder %s112_s22, %s2692_s5  ;;  %p2697_p8 = scmp.lt.s32.totalorder %s112_s22, %s112_s22 }
  0x58   :  { %p2698_p9 = scmp.lt.s32.totalorder %s2696_s13, %s2692_s5 }
  0x5a   :  { %p2699_p10 = por %p2698_p9, %p2697_p8 }
  0x5c   :  { %p2700_p11 = pnand %p2699_p10, %p2693_p7 }
  0x5e   :  { %2703 = shalt.err (!%p2700_p11)
}
  0x5f   :  { %114 = dma.hbm_to_vmem [thread:$0]  %s3216_s7, 16, %s112_s22, [#allocation15]  }
  0x60   :  { %s2704_s3 = scalar_lea.hbm %s3211_s2, 8192 }
  0x61   :  { %p2705_p12 = scmp.ne.s32.totalorder %s3211_s2, %s2704_s3  ;;  %p2708_p13 = scmp.lt.u32.totalorder %s2704_s3, %s3211_s2 }
  0x63   :  { %p2710_p0 = pnand %p2708_p13, %p2705_p12 }
  0x65   :  { %2713 = shalt.err (!%p2710_p0)
}
  0x66   :  { %s2714_s0 = scalar_lea.vmem %s55_s14, 8192  ;;  %p2719_p2 = scmp.lt.s32.totalorder %s55_s14, %s55_s14 }
  0x67   :  { %p2715_p1 = scmp.ne.s32.totalorder %s55_s14, %s2714_s0  ;;  %p2720_p3 = scmp.lt.s32.totalorder %s2714_s0, %s2714_s0 }
  0x69   :  { %p2721_p4 = por %p2720_p3, %p2719_p2 }
  0x6b   :  { %p2722_p5 = pnand %p2721_p4, %p2715_p1 }
  0x6d   :  { %2725 = shalt.err (!%p2722_p5)
}
  0x6e   :  { %s2884_s7 = smov 64   ;;  %s2885_s22 = smov 4  }
  0x6f   :  { %60 = dma.hbm_to_vmem [thread:$0]  %s3211_s2, 8192, %s55_s14, [#allocation6], %s2884_s7, %s2884_s7, %s2885_s22  }
  0x70   :  { %s2886_s27 = smov [#allocation10]   ;;  %s2887_s15 = smov [#allocation13]  }
  0x71   :  { %s76_s12 = sshll.u32 %s2886_s27, 4  ;;  %s98_s5 = sshll.u32 %s2887_s15, 4  ;;  %s77_s12 = int_to_ptr.vmem [resolvable:$true] %s76_s12  ;;  %s99_s5 = int_to_ptr.vmem [resolvable:$true] %s98_s5 }
  0x72   :  { %s2726_s17 = scalar_lea.hbm %s3213_s4, 1024 }
  0x73   :  { %p2727_p6 = scmp.ne.s32.totalorder %s3213_s4, %s2726_s17  ;;  %p2730_p7 = scmp.lt.u32.totalorder %s2726_s17, %s3213_s4 }
  0x75   :  { %p2732_p8 = pnand %p2730_p7, %p2727_p6 }
  0x77   :  { %2735 = shalt.err (!%p2732_p8)
}
  0x78   :  { %s2736_s2 = scalar_lea.vmem %s77_s12, 1024  ;;  %p2741_p10 = scmp.lt.s32.totalorder %s77_s12, %s77_s12 }
  0x79   :  { %p2737_p9 = scmp.ne.s32.totalorder %s77_s12, %s2736_s2  ;;  %p2742_p11 = scmp.lt.s32.totalorder %s2736_s2, %s2736_s2 }
  0x7b   :  { %p2743_p12 = por %p2742_p11, %p2741_p10 }
  0x7d   :  { %p2744_p13 = pnand %p2743_p12, %p2737_p9 }
  0x7f   :  { %2747 = shalt.err (!%p2744_p13)
}
  0x80   :  { %82 = dma.hbm_to_vmem [thread:$0]  %s3213_s4, 1024, %s77_s12, [#allocation9], %s2884_s7, %s2884_s7, %s2885_s22  }
  0x81   :  { %s2748_s0 = scalar_lea.hbm %s3215_s6, 256 }
  0x82   :  { %p2749_p0 = scmp.ne.s32.totalorder %s3215_s6, %s2748_s0  ;;  %p2752_p1 = scmp.lt.u32.totalorder %s2748_s0, %s3215_s6 }
  0x84   :  { %p2754_p2 = pnand %p2752_p1, %p2749_p0 }
  0x86   :  { %2757 = shalt.err (!%p2754_p2)
}
  0x87   :  { %s2758_s13 = scalar_lea.vmem %s99_s5, 256  ;;  %p2763_p4 = scmp.lt.s32.totalorder %s99_s5, %s99_s5 }
  0x88   :  { %p2759_p3 = scmp.ne.s32.totalorder %s99_s5, %s2758_s13  ;;  %p2764_p5 = scmp.lt.s32.totalorder %s2758_s13, %s2758_s13 }
  0x8a   :  { %p2765_p6 = por %p2764_p5, %p2763_p4 }
  0x8c   :  { %p2766_p7 = pnand %p2765_p6, %p2759_p3 }
  0x8e   :  { %2769 = shalt.err (!%p2766_p7)
}
  0x8f   :  { %104 = dma.hbm_to_vmem [thread:$0]  %s3215_s6, 256, %s99_s5, [#allocation12], %s2884_s7, %s2884_s7, %s2885_s22  }
  0x90   :  { %s2888_s16 = smov [#allocation16]   ;;  %s2770_s3 = scalar_lea.hbm %s3217_s8, 8192 }
  0x91   :  { %s120_s17 = sshll.u32 %s2888_s16, 4  ;;  %p2771_p8 = scmp.ne.s32.totalorder %s3217_s8, %s2770_s3  ;;  %s121_s17 = int_to_ptr.vmem [resolvable:$true] %s120_s17 }
  0x92   :  { %p2774_p9 = scmp.lt.u32.totalorder %s2770_s3, %s3217_s8 }
  0x94   :  { %p2776_p10 = pnand %p2774_p9, %p2771_p8 }
  0x96   :  { %2779 = shalt.err (!%p2776_p10)
}
  0x97   :  { %s2780_s1 = scalar_lea.vmem %s121_s17, 8192  ;;  %p2785_p12 = scmp.lt.s32.totalorder %s121_s17, %s121_s17 }
  0x98   :  { %p2781_p11 = scmp.ne.s32.totalorder %s121_s17, %s2780_s1  ;;  %p2786_p13 = scmp.lt.s32.totalorder %s2780_s1, %s2780_s1 }
  0x9a   :  { %p2787_p0 = por %p2786_p13, %p2785_p12 }
  0x9c   :  { %p2788_p1 = pnand %p2787_p0, %p2781_p11 }
  0x9e   :  { %2791 = shalt.err (!%p2788_p1)
}
  0x9f   :  { %s2889_s6 = smov 512   ;;  %s2890_s23 = smov [#allocation17]  }
  0xa0   :  { %126 = dma.hbm_to_vmem [thread:$0]  %s3217_s8, 8192, %s121_s17, [#allocation15], %s2889_s6, %s2889_s6, %s2878_s18  }
  0xa1   :  { %s133_s0 = sshll.u32 %s2890_s23, 4  ;;  %s2792_s27 = scalar_lea.hbm %s3218_s9, 128  ;;  %s134_s0 = int_to_ptr.vmem [resolvable:$true] %s133_s0 }
  0xa2   :  { %p2793_p2 = scmp.ne.s32.totalorder %s3218_s9, %s2792_s27  ;;  %p2796_p3 = scmp.lt.u32.totalorder %s2792_s27, %s3218_s9 }
  0xa4   :  { %p2798_p4 = pnand %p2796_p3, %p2793_p2 }
  0xa6   :  { %2801 = shalt.err (!%p2798_p4)
}
  0xa7   :  { %s2802_s16 = scalar_lea.vmem %s134_s0, 128  ;;  %p2807_p6 = scmp.lt.s32.totalorder %s134_s0, %s134_s0 }
  0xa8   :  { %p2803_p5 = scmp.ne.s32.totalorder %s134_s0, %s2802_s16  ;;  %p2808_p7 = scmp.lt.s32.totalorder %s2802_s16, %s2802_s16 }
  0xaa   :  { %p2809_p8 = por %p2808_p7, %p2807_p6 }
  0xac   :  { %p2810_p9 = pnand %p2809_p8, %p2803_p5 }
  0xae   :  { %2813 = shalt.err (!%p2810_p9)
}
  0xaf   :  { %136 = dma.hbm_to_vmem [thread:$0]  %s3218_s9, 128, %s134_s0, [#allocation18]  }
  0xb0   :  { %2858 = dma.done.wait [#allocation3], 2048  }
  0xb1   :  { %2859 = vsyncadd [#allocation3], 4294965248 }
  0xb2   :  { %2860 = dma.done.wait [#allocation6], 8448  }
  0xb3   :  { %2861 = vsyncadd [#allocation6], 4294958848 }
  0xb4   :  { %2862 = dma.done.wait [#allocation9], 1040  }
  0xb5   :  { %2863 = vsyncadd [#allocation9], 4294966256 }
  0xb6   :  { %2864 = dma.done.wait [#allocation12], 272  }
  0xb7   :  { %2865 = vsyncadd [#allocation12], 4294967024 }
  0xb8   :  { %2866 = dma.done.wait [#allocation15], 8208  }
  0xb9   :  { %2867 = vsyncadd [#allocation15], 4294959088 }
  0xba   :  { %2868 = dma.done.wait [#allocation18], 128  }
  0xbb   :  { %2869 = vsyncadd [#allocation18], 4294967168  ;;  %v2460_v0 = vld [vmem:[#allocation7 + $0x40] sm:$0xff]   ;;  %v2464_v4 = vld [vmem:[#allocation7 + $0x48] sm:$0xff]   ;;  %v2891_v25 = vmov 1983009808   ;;  %v207_v27 = vlaneseq }
  0xbc   :  { %v2461_v1 = vld [vmem:[#allocation7 + $0xc0] sm:$0xff]   ;;  %2308 = vmatprep.subr.bf16.mxu0 %v2460_v0  ;;  %v2465_v5 = vld [vmem:[#allocation7 + $0xc8] sm:$0xff]   ;;  %v2468_v8 = vld [vmem:[#allocation7 + $0x50] sm:$0xff]   ;;  %v205_v26 = vunpack.c.l.s4 %v2891_v25  ;;  %vm2893_vm0 = vmmov 0   ;;  %s2894_s9 = smov 96   ;;  %vm1210_vm1 = vcmask 261120  }
  0xbd   :  { %v2462_v2 = vld [vmem:[#allocation7] sm:$0xff]   ;;  %2330 = vmatprep.subr.bf16.mxu1 %v2461_v1  ;;  %v2466_v6 = vld [vmem:[#allocation7 + $0x8] sm:$0xff]   ;;  %v2469_v9 = vld [vmem:[#allocation7 + $0xd0] sm:$0xff]   ;;  %v3094_v33 = vshrl.u32 %v207_v27, 7  ;;  %vm2120_vm2 = vcmask 523264   ;;  %vm2123_vm3 = vcmask 785408  }
  0xbe   :  { %v2463_v3 = vld [vmem:[#allocation7 + $0x80] sm:$0xff]   ;;  %2309 = vmatpush3.bf16.msra.mxu0 %v2462_v2  ;;  %v2467_v7 = vld [vmem:[#allocation7 + $0x88] sm:$0xff]   ;;  %v2470_v10 = vld [vmem:[#allocation7 + $0x10] sm:$0xff]   ;;  %v206_v32 = vunpack.c.0.s8 %v205_v26 }
  0xbf   :  { %2331 = vmatpush3.bf16.msra.mxu1 %v2463_v3  ;;  %2310 = vmatprep.subr.bf16.mxu0 %v2464_v4  ;;  %v2471_v11 = vld [vmem:[#allocation7 + $0x90] sm:$0xff]   ;;  %v2472_v12 = vld [vmem:[#allocation7 + $0x58] sm:$0xff]   ;;  %v2476_v16 = vld [vmem:[#allocation7 + $0x60] sm:$0xff]  }
  0xc0   :  { %2332 = vmatprep.subr.bf16.mxu1 %v2465_v5  ;;  %v2473_v13 = vld [vmem:[#allocation7 + $0xd8] sm:$0xff]   ;;  %v2477_v17 = vld [vmem:[#allocation7 + $0xe0] sm:$0xff]   ;;  %v2480_v20 = vld [vmem:[#allocation7 + $0x68] sm:$0xff]   ;;  %v3097_v37 = vsub.s32 %v206_v32, %v3094_v33 }
  0xc1   :  { %v2474_v14 = vld [vmem:[#allocation7 + $0x18] sm:$0xff]   ;;  %v2478_v18 = vld [vmem:[#allocation7 + $0x20] sm:$0xff]   ;;  %v2481_v21 = vld [vmem:[#allocation7 + $0xe8] sm:$0xff]  }
  0xc2   :  { %2311 = vmatpush3.bf16.msra.mxu0 %v2466_v6  ;;  %v2475_v15 = vld [vmem:[#allocation7 + $0x98] sm:$0xff]   ;;  %v2479_v19 = vld [vmem:[#allocation7 + $0xa0] sm:$0xff]   ;;  %v2482_v22 = vld [vmem:[#allocation7 + $0x28] sm:$0xff]  }
  0xc3   :  { %2333 = vmatpush3.bf16.msra.mxu1 %v2467_v7  ;;  %2312 = vmatprep.subr.bf16.mxu0 %v2468_v8  ;;  %v2483_v23 = vld [vmem:[#allocation7 + $0xa8] sm:$0xff]   ;;  %v2484_v24 = vld [vmem:[#allocation7 + $0x70] sm:$0xff]   ;;  %v2488_v31 = vld [vmem:[#allocation7 + $0x78] sm:$0xff]  }
  0xc4   :  { %2334 = vmatprep.subr.bf16.mxu1 %v2469_v9  ;;  %v2485_v28 = vld [vmem:[#allocation7 + $0xf0] sm:$0xff]   ;;  %v2489_v34 = vld [vmem:[#allocation7 + $0xf8] sm:$0xff]   ;;  %v2504_v53 = vld [vmem:[#allocation7 + $0x140] sm:$0xff]  }
  0xc5   :  { %v2486_v29 = vld [vmem:[#allocation7 + $0x30] sm:$0xff]   ;;  %v2490_v35 = vld [vmem:[#allocation7 + $0x38] sm:$0xff]   ;;  %v2505_v58 = vld [vmem:[#allocation7 + $0x1c0] sm:$0xff]  }
  0xc6   :  { %2313 = vmatpush3.bf16.msra.mxu0 %v2470_v10  ;;  %v2487_v30 = vld [vmem:[#allocation7 + $0xb0] sm:$0xff]   ;;  %v2491_v36 = vld [vmem:[#allocation7 + $0xb8] sm:$0xff]   ;;  %v2506_v62 = vld [vmem:[#allocation7 + $0x100] sm:$0xff]  }
  0xc7   :  { %2335 = vmatpush3.bf16.msra.mxu1 %v2471_v11  ;;  %2314 = vmatprep.subr.bf16.mxu0 %v2472_v12  ;;  %v2492_v38 = vld [vmem:[#allocation2] ss:$16 sps:$4 sm:$0xff]   ;;  %v2500_v43 = vld [vmem:[#allocation2 + $0x4] ss:$16 sps:$4 sm:$0xff]   ;;  %v2508_v4 = vld [vmem:[#allocation7 + $0x148] sm:$0xff]  }
  0xc8   :  { %2336 = vmatprep.subr.bf16.mxu1 %v2473_v13  ;;  %v2494_v39 = vld [vmem:[#allocation2 + $0x20] ss:$16 sps:$4 sm:$0xff]   ;;  %v210_v42 = vrot.slane %v2492_v38, %v3097_v37  ;;  %v2501_v44 = vld [vmem:[#allocation2 + $0x24] ss:$16 sps:$4 sm:$0xff]   ;;  %v217_v50 = vrot.slane %v2500_v43, %v3097_v37  ;;  %v2509_v7 = vld [vmem:[#allocation7 + $0x1c8] sm:$0xff]  }
  0xc9   :  { %v2496_v40 = vld [vmem:[#allocation2 + $0x40] ss:$16 sps:$4 sm:$0xff]   ;;  %v2502_v45 = vld [vmem:[#allocation2 + $0x44] ss:$16 sps:$4 sm:$0xff]   ;;  %v224_v46 = vrot.slane %v2494_v39, %v3097_v37  ;;  %v231_v51 = vrot.slane %v2501_v44, %v3097_v37  ;;  %v2510_v8 = vld [vmem:[#allocation7 + $0x108] sm:$0xff]  }
  0xca   :  { %2315 = vmatpush3.bf16.msra.mxu0 %v2474_v14  ;;  %v2498_v41 = vld [vmem:[#allocation2 + $0x60] ss:$16 sps:$4 sm:$0xff]   ;;  %v282_v47 = vrot.slane %v2496_v40, %v3097_v37  ;;  %v2503_v49 = vld [vmem:[#allocation2 + $0x64] ss:$16 sps:$4 sm:$0xff]   ;;  %v289_v52 = vrot.slane %v2502_v45, %v3097_v37  ;;  %v2511_v9 = vld [vmem:[#allocation7 + $0x188] sm:$0xff]  }
  0xcb   :  { %2337 = vmatpush3.bf16.msra.mxu1 %v2475_v15  ;;  %2316 = vmatprep.subr.bf16.mxu0 %v2476_v16  ;;  %v296_v48 = vrot.slane %v2498_v41, %v3097_v37  ;;  %v233_v54 = vcombine.high %v210_v42, %v224_v46  ;;  %v303_v56 = vrot.slane %v2503_v49, %v3097_v37  ;;  %v2507_v2 = vld [vmem:[#allocation7 + $0x180] sm:$0xff]   ;;  %v2512_v10 = vld [vmem:[#allocation7 + $0x150] sm:$0xff]   ;;  %v2516_v14 = vld [vmem:[#allocation7 + $0x158] sm:$0xff]  }
  0xcc   :  { %2338 = vmatprep.subr.bf16.mxu1 %v2477_v17  ;;  %v232_v57 = vcombine.low %v210_v42, %v224_v46  ;;  %v235_v59 = vcombine.high %v217_v50, %v231_v51  ;;  %v234_v61 = vcombine.low %v217_v50, %v231_v51  ;;  %v2513_v11 = vld [vmem:[#allocation7 + $0x1d0] sm:$0xff]   ;;  %v2517_v15 = vld [vmem:[#allocation7 + $0x1d8] sm:$0xff]   ;;  %v2527_v25 = vld [vmem:[#allocation7 + $0x1a8] sm:$0xff]  }
  0xcd   :  { %v305_v55 = vcombine.high %v282_v47, %v296_v48  ;;  %v304_v60 = vcombine.low %v282_v47, %v296_v48  ;;  %v307_v0 = vcombine.high %v289_v52, %v303_v56  ;;  %v306_v1 = vcombine.low %v289_v52, %v303_v56  ;;  %v2514_v12 = vld [vmem:[#allocation7 + $0x110] sm:$0xff]   ;;  %v2518_v16 = vld [vmem:[#allocation7 + $0x118] sm:$0xff]  }
  0xce   :  { %2317 = vmatpush3.bf16.msra.mxu0 %v2478_v18  ;;  %v2515_v13 = vld [vmem:[#allocation7 + $0x190] sm:$0xff]   ;;  %v2519_v17 = vld [vmem:[#allocation7 + $0x198] sm:$0xff]   ;;  %v2520_v18 = vld [vmem:[#allocation7 + $0x160] sm:$0xff]  }
  0xcf   :  { %2339 = vmatpush3.bf16.msra.mxu1 %v2479_v19  ;;  %2318 = vmatprep.subr.bf16.mxu0 %v2480_v20  ;;  %v361_v63 = vpack.c.bf16 %v305_v55, %v233_v54  ;;  %v360_v3 = vpack.c.bf16 %v304_v60, %v232_v57  ;;  %v363_v5 = vpack.c.bf16 %v307_v0, %v235_v59  ;;  %v2521_v19 = vld [vmem:[#allocation7 + $0x1e0] sm:$0xff]   ;;  %v2528_v26 = vld [vmem:[#allocation7 + $0x170] sm:$0xff]   ;;  %v2534_v32 = vld [vmem:[#allocation7 + $0x138] sm:$0xff]  }
  0xd0   :  { %2340 = vmatprep.subr.bf16.mxu1 %v2481_v21  ;;  %v362_v6 = vpack.c.bf16 %v306_v1, %v234_v61  ;;  %v2522_v20 = vld [vmem:[#allocation7 + $0x120] sm:$0xff]   ;;  %v2529_v27 = vld [vmem:[#allocation7 + $0x1f0] sm:$0xff]   ;;  %v2540_v38 = vld [vmem:[#allocation2 + $0x48] ss:$16 sps:$4 sm:$0xff]   ;;  %v2892_v1 = vmov 0.0  }
  0xd1   :  { %919 = vmatprep.mubr.bf16.mxu0 %v361_v63  ;;  %960 = vmatprep.mubr.bf16.mxu1 %v363_v5  ;;  %v2523_v21 = vld [vmem:[#allocation7 + $0x1a0] sm:$0xff]   ;;  %v2542_v39 = vld [vmem:[#allocation2 + $0x68] ss:$16 sps:$4 sm:$0xff]   ;;  %v2544_v40 = vld [vmem:[#allocation2 + $0xc] ss:$16 sps:$4 sm:$0xff]   ;;  %v318_v44 = vrot.slane %v2540_v38, %v3097_v37 }
  0xd2   :  { %2319 = vmatpush3.bf16.msra.mxu0 %v2482_v22  ;;  %v2524_v22 = vld [vmem:[#allocation7 + $0x168] sm:$0xff]   ;;  %v332_v47 = vrot.slane %v2542_v39, %v3097_v37  ;;  %v253_v48 = vrot.slane %v2544_v40, %v3097_v37 }
  0xd3   :  { %2341 = vmatpush3.bf16.msra.mxu1 %v2483_v23  ;;  %2320 = vmatprep.subr.bf16.mxu0 %v2484_v24  ;;  %v2525_v23 = vld [vmem:[#allocation7 + $0x1e8] sm:$0xff]  }
  0xd4   :  { %2342 = vmatprep.subr.bf16.mxu1 %v2485_v28  ;;  %v2526_v24 = vld [vmem:[#allocation7 + $0x128] sm:$0xff]   ;;  %v2530_v28 = vld [vmem:[#allocation7 + $0x130] sm:$0xff]   ;;  %v341_v54 = vcombine.high %v318_v44, %v332_v47  ;;  %v340_v56 = vcombine.low %v318_v44, %v332_v47  ;;  %v2231_v47 = vld [vmem:[#allocation11] ss:$0 sm:$0xff] }
  0xd5   :  { %v2545_v41 = vld [vmem:[#allocation2 + $0x2c] ss:$16 sps:$4 sm:$0xff]   ;;  %v2548_v0 = vld [vmem:[#allocation10] sm:$0xff]  }
  0xd6   :  { %2321 = vmatpush3.bf16.msra.mxu0 %v2486_v29  ;;  %v2531_v29 = vld [vmem:[#allocation7 + $0x1b0] sm:$0xff]   ;;  %v2546_v45 = vld [vmem:[#allocation2 + $0x4c] ss:$16 sps:$4 sm:$0xff]   ;;  %v267_v49 = vrot.slane %v2545_v41, %v3097_v37  ;;  %v2552_v5 = vld [vmem:[#allocation10 + $0x20] sm:$0xff]  }
  0xd7   :  { %2343 = vmatpush3.bf16.msra.mxu1 %v2487_v30  ;;  %2322 = vmatprep.subr.bf16.mxu0 %v2488_v31  ;;  %v2532_v30 = vld [vmem:[#allocation7 + $0x178] sm:$0xff]   ;;  %v325_v51 = vrot.slane %v2546_v45, %v3097_v37 }
  0xd8   :  { %2344 = vmatprep.subr.bf16.mxu1 %v2489_v34  ;;  %v2533_v31 = vld [vmem:[#allocation7 + $0x1f8] sm:$0xff]   ;;  %v271_v55 = vcombine.high %v253_v48, %v267_v49  ;;  %v270_v57 = vcombine.low %v253_v48, %v267_v49 }
  0xd9   :  { %v2535_v34 = vld [vmem:[#allocation7 + $0x1b8] sm:$0xff]  }
  0xda   :  { %2323 = vmatpush3.bf16.msra.mxu0 %v2490_v35  ;;  %v2536_v35 = vld [vmem:[#allocation2 + $0x8] ss:$16 sps:$4 sm:$0xff]   ;;  %v2547_v46 = vld [vmem:[#allocation2 + $0x6c] ss:$16 sps:$4 sm:$0xff]  }
  0xdb   :  { %2345 = vmatpush3.bf16.msra.mxu1 %v2491_v36  ;;  %2352 = vmatprep.subr.bf16.mxu0 %v2504_v53  ;;  %v2538_v36 = vld [vmem:[#allocation2 + $0x28] ss:$16 sps:$4 sm:$0xff]   ;;  %v246_v42 = vrot.slane %v2536_v35, %v3097_v37  ;;  %v339_v52 = vrot.slane %v2547_v46, %v3097_v37 }
  0xdc   :  { %2374 = vmatprep.subr.bf16.mxu1 %v2505_v58  ;;  %v260_v43 = vrot.slane %v2538_v36, %v3097_v37 }
  0xdd   :  { %920 = vmatmul.mubr.bf16.vlgmr.msra.gmra.mrb[0].mxu0 %v360_v3  ;;  %v343_v58 = vcombine.high %v325_v51, %v339_v52  ;;  %v342_v59 = vcombine.low %v325_v51, %v339_v52  ;;  %v2550_v3 = vld [vmem:[#allocation10 + $0x10] sm:$0xff]  }
  0xde   :  { %2353 = vmatpush3.bf16.msra.mxu0 %v2506_v62  ;;  %961 = vmatmul.mubr.bf16.vlgmr.msra.gmra.mrb[0].mxu1 %v362_v6  ;;  %v269_v50 = vcombine.high %v246_v42, %v260_v43  ;;  %v268_v53 = vcombine.low %v246_v42, %v260_v43  ;;  %v2553_v6 = vld [vmem:[#allocation10 + $0x28] sm:$0xff]  }
  0xdf   :  { %2354 = vmatprep.subr.bf16.mxu0 %v2508_v4  ;;  %2375 = vmatpush3.bf16.msra.mxu1 %v2507_v2  ;;  %v367_v62 = vpack.c.bf16 %v343_v58, %v271_v55  ;;  %v366_v63 = vpack.c.bf16 %v342_v59, %v270_v57  ;;  %v2549_v2 = vld [vmem:[#allocation10 + $0x8] sm:$0xff]   ;;  %v2551_v4 = vld [vmem:[#allocation10 + $0x18] sm:$0xff]  }
  0xe0   :  { %2376 = vmatprep.subr.bf16.mxu1 %v2509_v7  ;;  %v365_v60 = vpack.c.bf16 %v341_v54, %v269_v50  ;;  %v364_v61 = vpack.c.bf16 %v340_v56, %v268_v53  ;;  %v2554_v7 = vld [vmem:[#allocation10 + $0x30] sm:$0xff]   ;;  %v2556_v57 = vld [vmem:[#allocation13] sm:$0xff]  }
  0xe1   :  { %1042 = vmatprep.mubr.bf16.mxu1 %v367_v62  ;;  %v2557_v59 = vld [vmem:[#allocation13 + $0x8] sm:$0xff]  }
  0xe2   :  { %2355 = vmatpush3.bf16.msra.mxu0 %v2510_v8  ;;  %1001 = vmatprep.mubr.bf16.mxu0 %v365_v60  ;;  %v2555_v8 = vld [vmem:[#allocation10 + $0x38] sm:$0xff]   ;;  %v1172_v62 = vld [vmem:[#allocation5] sm:$0xff] }
  0xe3   :  { %2356 = vmatprep.subr.bf16.mxu0 %v2512_v10  ;;  %2377 = vmatpush3.bf16.msra.mxu1 %v2511_v9  ;;  %v2166_v10 = vld [vmem:[#allocation8] ss:$0 sm:$0xff] }
  0xe4   :  { %2378 = vmatprep.subr.bf16.mxu1 %v2513_v11 }
  0xe6   :  { %2357 = vmatpush3.bf16.msra.mxu0 %v2514_v12 }
  0xe7   :  { %2358 = vmatprep.subr.bf16.mxu0 %v2516_v14  ;;  %2379 = vmatpush3.bf16.msra.mxu1 %v2515_v13 }
  0xe8   :  { %2380 = vmatprep.subr.bf16.mxu1 %v2517_v15 }
  0xea   :  { %2359 = vmatpush3.bf16.msra.mxu0 %v2518_v16 }
  0xeb   :  { %2360 = vmatprep.subr.bf16.mxu0 %v2520_v18  ;;  %2381 = vmatpush3.bf16.msra.mxu1 %v2519_v17 }
  0xec   :  { %2382 = vmatprep.subr.bf16.mxu1 %v2521_v19 }
  0xee   :  { %2361 = vmatpush3.bf16.msra.mxu0 %v2522_v20 }
  0xef   :  { %2362 = vmatprep.subr.bf16.mxu0 %v2524_v22  ;;  %2383 = vmatpush3.bf16.msra.mxu1 %v2523_v21 }
  0xf0   :  { %2384 = vmatprep.subr.bf16.mxu1 %v2525_v23 }
  0xf2   :  { %2363 = vmatpush3.bf16.msra.mxu0 %v2526_v24 }
  0xf3   :  { %2364 = vmatprep.subr.bf16.mxu0 %v2528_v26  ;;  %2385 = vmatpush3.bf16.msra.mxu1 %v2527_v25 }
  0xf4   :  { %2386 = vmatprep.subr.bf16.mxu1 %v2529_v27 }
  0xf6   :  { %2365 = vmatpush3.bf16.msra.mxu0 %v2530_v28 }
  0xf7   :  { %2366 = vmatprep.subr.bf16.mxu0 %v2532_v30  ;;  %2387 = vmatpush3.bf16.msra.mxu1 %v2531_v29 }
  0xf8   :  { %2388 = vmatprep.subr.bf16.mxu1 %v2533_v31 }
  0xfa   :  { %2367 = vmatpush3.bf16.msra.mxu0 %v2534_v32 }
  0xfb   :  { %2389 = vmatpush3.bf16.msra.mxu1 %v2535_v34  ;;  %2408 = vmatprep.subr.bf16.mxu0 %v2892_v1 }
  0xfc   :  { %2428 = vmatprep.subr.bf16.mxu1 %v2892_v1 }
  0xfd   :  { %1002 = vmatmul.mubr.bf16.vlgmr.msra.gmra.mrb[4].mxu0 %v364_v61 }
  0xfe   :  { %1043 = vmatmul.mubr.bf16.vlgmr.msra.gmra.mrb[4].mxu1 %v366_v63  ;;  %2409 = vmatpush3.bf16.msra.mxu0 %v2548_v0  ;;  %v1258_v63 = vld [vmem:[#allocation16] sm:$0xff] }
  0xff   :  { %2410 = vmatprep.subr.bf16.mxu0 %v2892_v1  ;;  %2424 = vmatprep.mubr.msk.bf16.mxu0 %vm2893_vm0, %v2892_v1  ;;  %v1262_v0 = vld [vmem:[#allocation16 + $0x20] sm:$0xff] }
 0x100   :  { %2432 = vmatprep.mubr.msk.bf16.mxu1 %vm2893_vm0, %v2892_v1  ;;  %2429 = vmatpush3.bf16.msra.mxu1 %v2556_v57 }
 0x101   :  { %2430 = vmatprep.subr.bf16.mxu1 %v2892_v1 }
 0x102   :  { %2411 = vmatpush3.bf16.msra.mxu0 %v2549_v2  ;;  %v1259_v2 = vld [vmem:[#allocation16 + $0x8] sm:$0xff] }
 0x103   :  { %2412 = vmatprep.subr.bf16.mxu0 %v2892_v1 }
 0x104   :  { %2431 = vmatpush3.bf16.msra.mxu1 %v2557_v59  ;;  %v1306_v59 = vld [vmem:[#allocation16 + $0x180] sm:$0xff] }
 0x106   :  { %2413 = vmatpush3.bf16.msra.mxu0 %v2550_v3  ;;  %v2245_v3 = vcombine.high %v1258_v63, %v1262_v0 }
 0x107   :  { %2414 = vmatprep.subr.bf16.mxu0 %v2892_v1 }
 0x108   :  { %1684 = vmatprep.subr.bf16.mxu1 %v2245_v3 }
 0x10a   :  { %2415 = vmatpush3.bf16.msra.mxu0 %v2551_v4  ;;  %v1263_v4 = vld [vmem:[#allocation16 + $0x28] sm:$0xff] }
 0x10b   :  { %2416 = vmatprep.subr.bf16.mxu0 %v2892_v1 }
 0x10e   :  { %2417 = vmatpush3.bf16.msra.mxu0 %v2552_v5 }
 0x10f   :  { %2418 = vmatprep.subr.bf16.mxu0 %v2892_v1 }
 0x112   :  { %2419 = vmatpush3.bf16.msra.mxu0 %v2553_v6  ;;  %v2246_v6 = vcombine.low %v1259_v2, %v1263_v4 }
 0x113   :  { %2420 = vmatprep.subr.bf16.mxu0 %v2892_v1 }
 0x116   :  { %2421 = vmatpush3.bf16.msra.mxu0 %v2554_v7  ;;  %v2247_v7 = vcombine.high %v1259_v2, %v1263_v4  ;;  %v1314_v4 = vld [vmem:[#allocation16 + $0x1c0] sm:$0xff] }
 0x117   :  { %2422 = vmatprep.subr.bf16.mxu0 %v2892_v1 }
 0x11a   :  { %2423 = vmatpush3.bf16.msra.mxu0 %v2555_v8  ;;  %v1267_v8 = vld [vmem:[#allocation16 + $0x48] sm:$0xff] }
 0x11b   :  { %1727 = vmatprep.subr.bf16.mxu0 %v2247_v7 }
 0x1b0   :  { %v2324_v9 = vpop.f32.mrb[0].mxu0 }
 0x1b1   :  { %v2325_v11 = vpop.f32.mrb[1].mxu0  ;;  %v2346_v12 = vpop.f32.mrb[0].mxu1 }
 0x1b2   :  { %v2326_v13 = vadd.f32 %v2325_v11, %v2324_v9  ;;  %v2327_v14 = vpop.f32.mrb[2].mxu0  ;;  %v2347_v15 = vpop.f32.mrb[1].mxu1  ;;  %v1271_v9 = vld [vmem:[#allocation16 + $0x68] sm:$0xff] }
 0x1b3   :  { %v2328_v16 = vpop.f32.mrb[3].mxu0  ;;  %v2348_v18 = vadd.f32 %v2347_v15, %v2346_v12  ;;  %v2349_v19 = vpop.f32.mrb[2].mxu1  ;;  %v1275_v11 = vld [vmem:[#allocation16 + $0x88] sm:$0xff]  ;;  %v2254_v15 = vcombine.low %v1267_v8, %v1271_v9 }
 0x1b4   :  { %v922_v17 = vadd.f32 %v2326_v13, %v2166_v10  ;;  %v2329_v20 = vadd.f32 %v2328_v16, %v2327_v14  ;;  %v2350_v21 = vpop.f32.mrb[3].mxu1  ;;  %v1279_v12 = vld [vmem:[#allocation16 + $0xa8] sm:$0xff] }
 0x1b5   :  { %v2351_v24 = vadd.f32 %v2350_v21, %v2349_v19  ;;  %v1173_v13 = vld [vmem:[#allocation5 + $0x8] sm:$0xff] }
 0x1b6   :  { %v963_v22 = vadd.f32 %v2348_v18, %v922_v17  ;;  %v925_v23 = vadd.f32 %v2329_v20, %v2166_v10  ;;  %v2255_v10 = vcombine.high %v1267_v8, %v1271_v9  ;;  %v2263_v17 = vcombine.high %v1275_v11, %v1279_v12  ;;  %v1283_v19 = vld [vmem:[#allocation16 + $0xc8] sm:$0xff]  ;;  %v1266_v21 = vld [vmem:[#allocation16 + $0x40] sm:$0xff] }
 0x1b7   :  { %v1287_v20 = vld [vmem:[#allocation16 + $0xe8] sm:$0xff] }
 0x1b8   :  { %v966_v25 = vadd.f32 %v2351_v24, %v925_v23  ;;  %v2262_v24 = vcombine.low %v1275_v11, %v1279_v12  ;;  %v1319_v8 = vld [vmem:[#allocation16 + $0x1e8] sm:$0xff]  ;;  %v1260_v11 = vld [vmem:[#allocation16 + $0x10] sm:$0xff] }
 0x1b9   :  { %v1264_v12 = vld [vmem:[#allocation16 + $0x30] sm:$0xff] }
 0x1d0   :  { %v2368_v26 = vpop.f32.mrb[4].mxu0 }
 0x1d1   :  { %v2390_v27 = vpop.f32.mrb[4].mxu1  ;;  %v2369_v28 = vpop.f32.mrb[5].mxu0 }
 0x1d2   :  { %v2370_v29 = vadd.f32 %v2369_v28, %v2368_v26  ;;  %v2391_v30 = vpop.f32.mrb[5].mxu1  ;;  %v2371_v31 = vpop.f32.mrb[6].mxu0  ;;  %v2271_v26 = vcombine.high %v1283_v19, %v1287_v20 }
 0x1d3   :  { %v2392_v32 = vadd.f32 %v2391_v30, %v2390_v27  ;;  %v2393_v34 = vpop.f32.mrb[6].mxu1  ;;  %v2372_v35 = vpop.f32.mrb[7].mxu0  ;;  %v1295_v30 = vld [vmem:[#allocation16 + $0x128] sm:$0xff] }
 0x1d4   :  { %v1004_v36 = vadd.f32 %v2370_v29, %v963_v22  ;;  %v2373_v38 = vadd.f32 %v2372_v35, %v2371_v31  ;;  %v2394_v39 = vpop.f32.mrb[7].mxu1  ;;  %v1270_v22 = vld [vmem:[#allocation16 + $0x60] sm:$0xff]  ;;  %v1291_v29 = vld [vmem:[#allocation16 + $0x108] sm:$0xff] }
 0x1d5   :  { %v2395_v40 = vadd.f32 %v2394_v39, %v2393_v34  ;;  %v2253_v28 = vcombine.high %v1266_v21, %v1270_v22  ;;  %v1274_v31 = vld [vmem:[#allocation16 + $0x80] sm:$0xff]  ;;  %v2270_v34 = vcombine.low %v1283_v19, %v1287_v20  ;;  %v2252_v35 = vcombine.low %v1266_v21, %v1270_v22  ;;  %v1299_v39 = vld [vmem:[#allocation16 + $0x148] sm:$0xff] }
 0x1d6   :  { %v1045_v41 = vadd.f32 %v2392_v32, %v1004_v36  ;;  %v1007_v42 = vadd.f32 %v2373_v38, %v966_v25  ;;  %v2244_v25 = vcombine.low %v1258_v63, %v1262_v0  ;;  %v1278_v32 = vld [vmem:[#allocation16 + $0xa0] sm:$0xff]  ;;  %v2279_v36 = vcombine.high %v1291_v29, %v1295_v30  ;;  %v1311_v63 = vld [vmem:[#allocation16 + $0x1a8] sm:$0xff] }
 0x1d7   :  { %v2261_v38 = vcombine.high %v1274_v31, %v1278_v32 }
 0x1d8   :  { %v1048_v43 = vadd.f32 %v2395_v40, %v1007_v42  ;;  %v1051_v44 = vmax.f32 %v1045_v41, 0.0  ;;  %v1303_v40 = vld [vmem:[#allocation16 + $0x168] sm:$0xff]  ;;  %v1282_v41 = vld [vmem:[#allocation16 + $0xc0] sm:$0xff] }
 0x1d9   :  { %v1286_v42 = vld [vmem:[#allocation16 + $0xe0] sm:$0xff] }
 0x1da   :  { %v1052_v45 = vmax.f32 %v1048_v43, 0.0  ;;  %v2278_v43 = vcombine.low %v1291_v29, %v1295_v30 }
 0x1dc   :  { %v1053_v46 = vpack.c.bf16 %v1052_v45, %v1051_v44  ;;  %v2260_v44 = vcombine.low %v1274_v31, %v1278_v32  ;;  %v2287_v45 = vcombine.high %v1299_v39, %v1303_v40 }
 0x1de   :  { %2425 = vmatmul.mubr.bf16.vlgmr.msra.gmra.mrb[8].mxu0 %v1053_v46  ;;  %v2269_v46 = vcombine.high %v1282_v41, %v1286_v42 }
 0x1df   :  { %1728 = vmatpush1.bf16.msra.mxu0 %v2246_v6  ;;  %v1315_v6 = vld [vmem:[#allocation16 + $0x1c8] sm:$0xff] }
 0x1e0   :  { %1729 = vmatprep.subr.bf16.mxu0 %v2255_v10  ;;  %v2303_v10 = vcombine.high %v1315_v6, %v1319_v8 }
 0x1e3   :  { %1730 = vmatpush1.bf16.msra.mxu0 %v2254_v15  ;;  %v2249_v15 = vcombine.high %v1260_v11, %v1264_v12 }
 0x1e4   :  { %1731 = vmatprep.subr.bf16.mxu0 %v2263_v17  ;;  %v2895_v17 = vmov 0  }
 0x1e5   :  { %1759 = vmatprep.mubr.bf16.mxu0 %v2895_v17 }
 0x1e7   :  { %1732 = vmatpush1.bf16.msra.mxu0 %v2262_v24 }
 0x1e8   :  { %1733 = vmatprep.subr.bf16.mxu0 %v2271_v26  ;;  %v2240_v26 = vld [vmem:[#allocation14] ss:$0 sm:$0xff] }
 0x1eb   :  { %1734 = vmatpush1.bf16.msra.mxu0 %v2270_v34  ;;  %v1268_v34 = vld [vmem:[#allocation16 + $0x50] sm:$0xff] }
 0x1ec   :  { %1735 = vmatprep.subr.bf16.mxu0 %v2279_v36  ;;  %v1269_v36 = vld [vmem:[#allocation16 + $0x58] sm:$0xff] }
 0x1ef   :  { %1736 = vmatpush1.bf16.msra.mxu0 %v2278_v43  ;;  %v1280_v43 = vld [vmem:[#allocation16 + $0xb0] sm:$0xff] }
 0x1f0   :  { %1737 = vmatprep.subr.bf16.mxu0 %v2287_v45  ;;  %v1281_v45 = vld [vmem:[#allocation16 + $0xb8] sm:$0xff] }
 0x2b1   :  { %v1159_v48 = vpop.f32.mrb[8].mxu0 }
 0x2b2   :  { %v3126_v49 = vadd.f32 %v2231_v47, %v1159_v48  ;;  %v2426_v50 = vpop.f32.mrb[9].mxu0  ;;  %v1294_v48 = vld [vmem:[#allocation16 + $0x120] sm:$0xff] }
 0x2b3   :  { %v1162_v51 = vpop.f32.mrb[10].mxu0  ;;  %v2286_v50 = vcombine.low %v1299_v39, %v1303_v40 }
 0x2b4   :  { %v1166_v52 = vmul.f32 0.5, %v3126_v49  ;;  %v3129_v53 = vadd.f32 %v2231_v47, %v1162_v51  ;;  %v2427_v54 = vpop.f32.mrb[11].mxu0  ;;  %v1290_v47 = vld [vmem:[#allocation16 + $0x100] sm:$0xff]  ;;  %v2268_v51 = vcombine.low %v1282_v41, %v1286_v42 }
 0x2b5   :  { %v1298_v54 = vld [vmem:[#allocation16 + $0x140] sm:$0xff]  ;;  %1738 = vmatpush1.bf16.msra.mxu0 %v2286_v50 }
 0x2b6   :  { %v1168_v55 = vmul.f32 1.442695, %v1166_v52  ;;  %v1167_v56 = vmul.f32 0.5, %v3129_v53  ;;  %v2277_v52 = vcombine.high %v1290_v47, %v1294_v48 }
 0x2b8   :  { %2558 = vpow2.f32 %v1168_v55  ;;  %v1170_v58 = vmul.f32 1.442695, %v1167_v56  ;;  %v1302_v55 = vld [vmem:[#allocation16 + $0x160] sm:$0xff]  ;;  %v2276_v56 = vcombine.low %v1290_v47, %v1294_v48 }
 0x2b9   :  { %v2285_v57 = vcombine.high %v1298_v54, %v1302_v55 }
 0x2ba   :  { %2560 = vpow2.f32 %v1170_v58  ;;  %v2284_v58 = vcombine.low %v1298_v54, %v1302_v55  ;;  %v1285_v54 = vld [vmem:[#allocation16 + $0xd8] sm:$0xff] }
 0x2bb   :  { %v1289_v55 = vld [vmem:[#allocation16 + $0xf8] sm:$0xff] }
 0x2c2   :  { %v2559_v60 = vpop.eup %2558 }
 0x2c3   :  { %1176 = vrot.lane.b32.xlu0 %v2559_v60, %s2894_s9  ;;  %v1310_v60 = vld [vmem:[#allocation16 + $0x1a0] sm:$0xff] }
 0x2c4   :  { %v2561_v61 = vpop.eup %2560  ;;  %v2292_v0 = vcombine.low %v1306_v59, %v1310_v60 }
 0x2c7   :  { %1178 = vrot.lane.b32.xlu0 %v2561_v61, %s2894_s9  ;;  %v1307_v61 = vld [vmem:[#allocation16 + $0x188] sm:$0xff] }
 0x2c8   :  { %v2294_v2 = vcombine.low %v1307_v61, %v1311_v63  ;;  %v2295_v3 = vcombine.high %v1307_v61, %v1311_v63  ;;  %v1296_v61 = vld [vmem:[#allocation16 + $0x130] sm:$0xff]  ;;  %v1297_v63 = vld [vmem:[#allocation16 + $0x138] sm:$0xff] }
 0x2ca   :  { %1739 = vmatprep.subr.bf16.mxu0 %v2295_v3 }
 0x2cb   :  { %1740 = vmatpush1.bf16.msra.mxu0 %v2294_v2  ;;  %v2274_v2 = vcombine.low %v1285_v54, %v1289_v55 }
 0x2cc   :  { %1741 = vmatprep.subr.bf16.mxu0 %v2303_v10 }
 0x335   :  { %v1177_v5 = vpop.permute.xlu0 %1176 }
 0x336   :  { %v1182_v1 = vmul.f32 %v1177_v5, %v1172_v62  ;;  %v2293_v62 = vcombine.high %v1306_v59, %v1310_v60  ;;  %v1318_v5 = vld [vmem:[#allocation16 + $0x1e0] sm:$0xff]  ;;  %v2275_v59 = vcombine.high %v1285_v54, %v1289_v55  ;;  %v1292_v60 = vld [vmem:[#allocation16 + $0x110] sm:$0xff] }
 0x337   :  { %v2301_v7 = vcombine.high %v1314_v4, %v1318_v5  ;;  %v2300_v9 = vcombine.low %v1314_v4, %v1318_v5  ;;  %v2281_v3 = vcombine.high %v1292_v60, %v1296_v61  ;;  %v1300_v5 = vld [vmem:[#allocation16 + $0x150] sm:$0xff] }
 0x338   :  { %v1184_v14 = vadd.f32 %v1182_v1, %v3126_v49  ;;  %v2302_v1 = vcombine.low %v1315_v6, %v1319_v8  ;;  %v1304_v6 = vld [vmem:[#allocation16 + $0x170] sm:$0xff]  ;;  %v1305_v8 = vld [vmem:[#allocation16 + $0x178] sm:$0xff] }
 0x339   :  { %v1179_v16 = vpop.permute.xlu0 %1178  ;;  %v2289_v10 = vcombine.high %v1300_v5, %v1304_v6 }
 0x33a   :  { %v1183_v18 = vmul.f32 %v1179_v16, %v1173_v13  ;;  %2114 = vrot.lane.b32.xlu1 %v1184_v14, %s2884_s7  ;;  %v1261_v13 = vld [vmem:[#allocation16 + $0x18] sm:$0xff]  ;;  %1742 = vmatpush1.bf16.msra.mxu0 %v2302_v1 }
 0x33b   :  { %v1265_v16 = vld [vmem:[#allocation16 + $0x38] sm:$0xff] }
 0x33c   :  { %v1185_v23 = vadd.f32 %v1183_v18, %v3129_v53  ;;  %v2250_v18 = vcombine.low %v1261_v13, %v1265_v16  ;;  %v2251_v19 = vcombine.high %v1261_v13, %v1265_v16  ;;  %v1312_v13 = vld [vmem:[#allocation16 + $0x1b0] sm:$0xff]  ;;  %v2288_v16 = vcombine.low %v1300_v5, %v1304_v6 }
 0x33e   :  { %2116 = vrot.lane.b32.xlu1 %v1185_v23, %s2884_s7  ;;  %v1186_v27 = vpack.c.bf16 %v1185_v23, %v1184_v14  ;;  %v2248_v14 = vcombine.low %v1260_v11, %v1264_v12  ;;  %1813 = vmatprep.subr.bf16.mxu0 %v2251_v19  ;;  %v1308_v12 = vld [vmem:[#allocation16 + $0x190] sm:$0xff] }
 0x340   :  { %2433 = vmatmul.mubr.msk.bf16.vlgmr.msra.gmra.mrb[8].mxu1 %vm1210_vm1, %v1186_v27 }
 0x341   :  { %1685 = vmatpush1.bf16.msra.mxu1 %v2244_v25  ;;  %1716 = vmatprep.mubr.bf16.mxu1 %v2895_v17 }
 0x342   :  { %1686 = vmatprep.subr.bf16.mxu1 %v2253_v28 }
 0x345   :  { %1687 = vmatpush1.bf16.msra.mxu1 %v2252_v35  ;;  %v1272_v35 = vld [vmem:[#allocation16 + $0x70] sm:$0xff] }
 0x346   :  { %1688 = vmatprep.subr.bf16.mxu1 %v2261_v38  ;;  %v1273_v38 = vld [vmem:[#allocation16 + $0x78] sm:$0xff]  ;;  %v2257_v41 = vcombine.high %v1268_v34, %v1272_v35 }
 0x347   :  { %v2259_v42 = vcombine.high %v1269_v36, %v1273_v38  ;;  %v2258_v47 = vcombine.low %v1269_v36, %v1273_v38 }
 0x349   :  { %1689 = vmatpush1.bf16.msra.mxu1 %v2260_v44  ;;  %v1277_v44 = vld [vmem:[#allocation16 + $0x98] sm:$0xff] }
 0x34a   :  { %1690 = vmatprep.subr.bf16.mxu1 %v2269_v46  ;;  %v2256_v46 = vcombine.low %v1268_v34, %v1272_v35  ;;  %v2267_v50 = vcombine.high %v1277_v44, %v1281_v45  ;;  %v1330_v34 = vsub.s32 1, %v3094_v33  ;;  %v1338_v35 = vsub.s32 3, %v3094_v33 }
 0x34d   :  { %1691 = vmatpush1.bf16.msra.mxu1 %v2268_v51  ;;  %v1284_v51 = vld [vmem:[#allocation16 + $0xd0] sm:$0xff] }
 0x34e   :  { %1692 = vmatprep.subr.bf16.mxu1 %v2277_v52  ;;  %v1288_v52 = vld [vmem:[#allocation16 + $0xf0] sm:$0xff] }
 0x351   :  { %1693 = vmatpush1.bf16.msra.mxu1 %v2276_v56 }
 0x352   :  { %1694 = vmatprep.subr.bf16.mxu1 %v2285_v57  ;;  %v2266_v57 = vcombine.low %v1277_v44, %v1281_v45 }
 0x355   :  { %1695 = vmatpush1.bf16.msra.mxu1 %v2284_v58  ;;  %v2273_v58 = vcombine.high %v1284_v51, %v1288_v52 }
 0x356   :  { %1696 = vmatprep.subr.bf16.mxu1 %v2293_v62  ;;  %v1293_v62 = vld [vmem:[#allocation16 + $0x118] sm:$0xff] }
 0x357   :  { %v2283_v4 = vcombine.high %v1293_v62, %v1297_v63  ;;  %v2282_v1 = vcombine.low %v1293_v62, %v1297_v63 }
 0x359   :  { %1697 = vmatpush1.bf16.msra.mxu1 %v2292_v0  ;;  %v2272_v0 = vcombine.low %v1284_v51, %v1288_v52 }
 0x35a   :  { %1698 = vmatprep.subr.bf16.mxu1 %v2301_v7  ;;  %v1301_v7 = vld [vmem:[#allocation16 + $0x158] sm:$0xff] }
 0x35b   :  { %v2291_v11 = vcombine.high %v1301_v7, %v1305_v8 }
 0x35d   :  { %1699 = vmatpush1.bf16.msra.mxu1 %v2300_v9  ;;  %v2280_v9 = vcombine.low %v1292_v60, %v1296_v61 }
 0x35e   :  { %1770 = vmatprep.subr.bf16.mxu1 %v2249_v15  ;;  %v1313_v15 = vld [vmem:[#allocation16 + $0x1b8] sm:$0xff] }
 0x3ac   :  { %v2115_v20 = vpop.permute.xlu1 %2114 }
 0x3ad   :  { %v2121_v21 = vsel %vm2120_vm2, %v3126_v49, %v2115_v20  ;;  %v1316_v20 = vld [vmem:[#allocation16 + $0x1d0] sm:$0xff] }
 0x3ae   :  { %v2124_v22 = vsel %vm2123_vm3, %v2121_v21, 0.0  ;;  %v1320_v21 = vld [vmem:[#allocation16 + $0x1f0] sm:$0xff] }
 0x3af   :  { %2126 = vst [vmem:[#allocation20] sm:$0xff] %v2124_v22  ;;  %v1317_v22 = vld [vmem:[#allocation16 + $0x1d8] sm:$0xff] }
 0x3b0   :  { %v2117_v23 = vpop.permute.xlu1 %2116 }
 0x3b1   :  { %v2122_v24 = vsel %vm2120_vm2, %v3129_v53, %v2117_v23  ;;  %v1276_v53 = vld [vmem:[#allocation16 + $0x90] sm:$0xff]  ;;  %v1321_v23 = vld [vmem:[#allocation16 + $0x1f8] sm:$0xff] }
 0x3b2   :  { %v2125_v25 = vsel %vm2123_vm3, %v2122_v24, 0.0  ;;  %v2265_v48 = vcombine.high %v1276_v53, %v1280_v43  ;;  %v2264_v56 = vcombine.low %v1276_v53, %v1280_v43  ;;  %v2296_v24 = vcombine.low %v1308_v12, %v1312_v13 }
 0x3b3   :  { %2127 = vst [vmem:[#allocation20 + $0x8] sm:$0xff] %v2125_v25 }
 0x413   :  { %v1248_v27 = vpop.f32.mrb[8].mxu1 }
 0x414   :  { %v1249_v28 = vadd.f32 %v2240_v26, %v1248_v27  ;;  %v2434_v29 = vpop.f32.mrb[9].mxu1  ;;  %v2307_v27 = vcombine.high %v1317_v22, %v1321_v23 }
 0x415   :  { %v1251_v30 = vpop.f32.mrb[10].mxu1  ;;  %v2306_v29 = vcombine.low %v1317_v22, %v1321_v23 }
 0x416   :  { %v1252_v31 = vadd.f32 %v2240_v26, %v1251_v30  ;;  %v2435_v32 = vpop.f32.mrb[11].mxu1  ;;  %v1255_v39 = vmax.f32 %v1249_v28, 0.0  ;;  %v2305_v26 = vcombine.high %v1316_v20, %v1320_v21  ;;  %v2304_v28 = vcombine.low %v1316_v20, %v1320_v21 }
 0x417   :  { %v1326_v30 = vsub.s32 0, %v3094_v33  ;;  %v3147_v32 = vld [vmem:[#allocation17] sm:$0xff] }
 0x418   :  { %v1256_v49 = vmax.f32 %v1252_v31, 0.0  ;;  %v1334_v31 = vsub.s32 2, %v3094_v33 }
 0x419   :  { %v1327_v36 = vrot.slane %v3147_v32, %v1326_v30 }
 0x41a   :  { %v3139_v40 = vpack.c.bf16 %v1256_v49, %v1255_v39  ;;  %v1335_v38 = vrot.slane %v3147_v32, %v1334_v31  ;;  %v1331_v39 = vrot.slane %v3147_v32, %v1330_v34  ;;  %v1339_v49 = vrot.slane %v3147_v32, %v1338_v35 }
 0x41c   :  { %1717 = vmatmul.mubr.bf16.vlgmr.msra.gmra.mrb[12].mxu1 %v3139_v40  ;;  %1760 = vmatmul.mubr.bf16.vlgmr.msra.gmra.mrb[12].mxu0 %v3139_v40 }
 0x41d   :  { %1771 = vmatpush1.bf16.msra.mxu1 %v2248_v14  ;;  %1814 = vmatpush1.bf16.msra.mxu0 %v2250_v18  ;;  %v1309_v14 = vld [vmem:[#allocation16 + $0x198] sm:$0xff]  ;;  %v2297_v18 = vcombine.high %v1308_v12, %v1312_v13 }
 0x41e   :  { %1772 = vmatprep.subr.bf16.mxu1 %v2257_v41  ;;  %1815 = vmatprep.subr.bf16.mxu0 %v2259_v42  ;;  %v2299_v19 = vcombine.high %v1309_v14, %v1313_v15  ;;  %v2298_v25 = vcombine.low %v1309_v14, %v1313_v15 }
 0x41f   :  { %1802 = vmatprep.mubr.bf16.mxu1 %v2895_v17  ;;  %1845 = vmatprep.mubr.bf16.mxu0 %v2895_v17  ;;  %v2290_v17 = vcombine.low %v1301_v7, %v1305_v8 }
 0x421   :  { %1773 = vmatpush1.bf16.msra.mxu1 %v2256_v46  ;;  %1816 = vmatpush1.bf16.msra.mxu0 %v2258_v47 }
 0x422   :  { %1774 = vmatprep.subr.bf16.mxu1 %v2265_v48  ;;  %1817 = vmatprep.subr.bf16.mxu0 %v2267_v50 }
 0x425   :  { %1775 = vmatpush1.bf16.msra.mxu1 %v2264_v56  ;;  %1818 = vmatpush1.bf16.msra.mxu0 %v2266_v57 }
 0x426   :  { %1776 = vmatprep.subr.bf16.mxu1 %v2273_v58  ;;  %1819 = vmatprep.subr.bf16.mxu0 %v2275_v59 }
 0x429   :  { %1777 = vmatpush1.bf16.msra.mxu1 %v2272_v0  ;;  %1820 = vmatpush1.bf16.msra.mxu0 %v2274_v2 }
 0x42a   :  { %1778 = vmatprep.subr.bf16.mxu1 %v2281_v3  ;;  %1821 = vmatprep.subr.bf16.mxu0 %v2283_v4 }
 0x42d   :  { %1779 = vmatpush1.bf16.msra.mxu1 %v2280_v9  ;;  %1822 = vmatpush1.bf16.msra.mxu0 %v2282_v1 }
 0x42e   :  { %1780 = vmatprep.subr.bf16.mxu1 %v2289_v10  ;;  %1823 = vmatprep.subr.bf16.mxu0 %v2291_v11 }
 0x431   :  { %1781 = vmatpush1.bf16.msra.mxu1 %v2288_v16  ;;  %1824 = vmatpush1.bf16.msra.mxu0 %v2290_v17 }
 0x432   :  { %1782 = vmatprep.subr.bf16.mxu1 %v2297_v18  ;;  %1825 = vmatprep.subr.bf16.mxu0 %v2299_v19 }
 0x435   :  { %1783 = vmatpush1.bf16.msra.mxu1 %v2296_v24  ;;  %1826 = vmatpush1.bf16.msra.mxu0 %v2298_v25 }
 0x436   :  { %1784 = vmatprep.subr.bf16.mxu1 %v2305_v26  ;;  %1827 = vmatprep.subr.bf16.mxu0 %v2307_v27  ;;  %v1342_v26 = vsub.s32 4, %v3094_v33 }
 0x439   :  { %1785 = vmatpush1.bf16.msra.mxu1 %v2304_v28  ;;  %1828 = vmatpush1.bf16.msra.mxu0 %v2306_v29 }
 0x43c   :  { %1803 = vmatmul.mubr.bf16.vlgmr.msra.gmra.mrb[16].mxu1 %v3139_v40  ;;  %1846 = vmatmul.mubr.bf16.vlgmr.msra.gmra.mrb[16].mxu0 %v3139_v40 }
 0x4ef   :  { %v1718_v41 = vpop.f32.mrb[12].mxu1  ;;  %v1761_v40 = vpop.f32.mrb[12].mxu0 }
 0x4f0   :  { %v1719_v42 = vadd.f32 %v1718_v41, %v1327_v36  ;;  %v1762_v53 = vadd.f32 %v1761_v40, %v1335_v38  ;;  %v1720_v43 = vpop.f32.mrb[13].mxu1  ;;  %v1763_v44 = vpop.f32.mrb[13].mxu0  ;;  %v1354_v41 = vsub.s32 7, %v3094_v33 }
 0x4f1   :  { %v1721_v45 = vadd.f32 %v1720_v43, %v1331_v39  ;;  %v1764_v46 = vadd.f32 %v1763_v44, %v1339_v49  ;;  %v1722_v47 = vpop.f32.mrb[14].mxu1  ;;  %v1765_v48 = vpop.f32.mrb[14].mxu0 }
 0x4f2   :  { %v1856_v50 = vmul.f32 0.5, %v1719_v42  ;;  %v1858_v51 = vmul.f32 0.5, %v1762_v53  ;;  %v1723_v52 = vadd.f32 %v1722_v47, %v1327_v36  ;;  %v1766_v54 = vadd.f32 %v1765_v48, %v1335_v38  ;;  %v1724_v55 = vpop.f32.mrb[15].mxu1  ;;  %v1767_v56 = vpop.f32.mrb[15].mxu0 }
 0x4f3   :  { %v1857_v57 = vmul.f32 0.5, %v1721_v45  ;;  %v1859_v58 = vmul.f32 0.5, %v1764_v46  ;;  %v1725_v59 = vadd.f32 %v1724_v55, %v1331_v39  ;;  %v1768_v60 = vadd.f32 %v1767_v56, %v1339_v49 }
 0x4f4   :  { %2562 = vtanh.f32 %v1856_v50  ;;  %v1864_v61 = vmul.f32 0.5, %v1723_v52  ;;  %v1866_v62 = vmul.f32 0.5, %v1766_v54  ;;  %v1350_v36 = vsub.s32 6, %v3094_v33 }
 0x4f5   :  { %2564 = vtanh.f32 %v1858_v51  ;;  %v1865_v63 = vmul.f32 0.5, %v1725_v59  ;;  %v1867_v0 = vmul.f32 0.5, %v1768_v60  ;;  %v1346_v49 = vsub.s32 5, %v3094_v33 }
 0x4f6   :  { %2566 = vtanh.f32 %v1857_v57  ;;  %v1343_v48 = vrot.slane %v3147_v32, %v1342_v26  ;;  %v1351_v50 = vrot.slane %v3147_v32, %v1350_v36  ;;  %v1355_v54 = vrot.slane %v3147_v32, %v1354_v41 }
 0x4f7   :  { %2568 = vtanh.f32 %v1859_v58  ;;  %v1347_v52 = vrot.slane %v3147_v32, %v1346_v49 }
 0x4f8   :  { %2570 = vtanh.f32 %v1864_v61 }
 0x4f9   :  { %2572 = vtanh.f32 %v1866_v62 }
 0x4fa   :  { %2574 = vtanh.f32 %v1865_v63 }
 0x4fb   :  { %2576 = vtanh.f32 %v1867_v0 }
 0x4fe   :  { %v2563_v2 = vpop.eup %2562 }
 0x4ff   :  { %v2565_v3 = vpop.eup %2564  ;;  %v1888_v4 = vmul.f32 0.5, %v2563_v2 }
 0x500   :  { %v2567_v5 = vpop.eup %2566  ;;  %v1890_v6 = vmul.f32 0.5, %v2565_v3 }
 0x501   :  { %v2569_v7 = vpop.eup %2568  ;;  %v1904_v8 = vadd.f32 0.5, %v1888_v4  ;;  %v1889_v9 = vmul.f32 0.5, %v2567_v5 }
 0x502   :  { %v2571_v1 = vpop.eup %2570  ;;  %v1906_v10 = vadd.f32 0.5, %v1890_v6  ;;  %v1891_v11 = vmul.f32 0.5, %v2569_v7 }
 0x503   :  { %v2573_v12 = vpop.eup %2572  ;;  %v1905_v13 = vadd.f32 0.5, %v1889_v9  ;;  %v1896_v14 = vmul.f32 0.5, %v2571_v1 }
 0x504   :  { %v2575_v15 = vpop.eup %2574  ;;  %v1907_v16 = vadd.f32 0.5, %v1891_v11  ;;  %v1898_v17 = vmul.f32 0.5, %v2573_v12 }
 0x505   :  { %v2577_v18 = vpop.eup %2576  ;;  %v1936_v19 = vcombine.low %v1904_v8, %v1905_v13  ;;  %v1937_v20 = vcombine.high %v1904_v8, %v1905_v13  ;;  %v1912_v21 = vadd.f32 0.5, %v1896_v14  ;;  %v1897_v22 = vmul.f32 0.5, %v2575_v15 }
 0x506   :  { %v1938_v23 = vcombine.low %v1906_v10, %v1907_v16  ;;  %v1939_v24 = vcombine.high %v1906_v10, %v1907_v16  ;;  %v1899_v25 = vmul.f32 0.5, %v2577_v18  ;;  %v1914_v29 = vadd.f32 0.5, %v1898_v17 }
 0x507   :  { %v1946_v27 = vrot.slane %v1936_v19, %v3097_v37  ;;  %v1953_v28 = vrot.slane %v1937_v20, %v3097_v37  ;;  %v1913_v30 = vadd.f32 0.5, %v1897_v22 }
 0x508   :  { %v1960_v31 = vrot.slane %v1938_v23, %v3097_v37  ;;  %v1967_v34 = vrot.slane %v1939_v24, %v3097_v37  ;;  %v1915_v35 = vadd.f32 0.5, %v1899_v25 }
 0x509   :  { %v2008_v38 = vcombine.low %v1912_v21, %v1913_v30  ;;  %v2009_v39 = vcombine.high %v1912_v21, %v1913_v30 }
 0x50a   :  { %v1968_v40 = vcombine.low %v1946_v27, %v1960_v31  ;;  %v1969_v42 = vcombine.high %v1946_v27, %v1960_v31  ;;  %v1970_v53 = vcombine.low %v1953_v28, %v1967_v34  ;;  %v1971_v43 = vcombine.high %v1953_v28, %v1967_v34 }
 0x50b   :  { %v2018_v44 = vrot.slane %v2008_v38, %v3097_v37  ;;  %v2025_v45 = vrot.slane %v2009_v39, %v3097_v37  ;;  %v2010_v46 = vcombine.low %v1914_v29, %v1915_v35  ;;  %v2011_v47 = vcombine.high %v1914_v29, %v1915_v35 }
 0x50c   :  { %2096 = vst [vmem:[#allocation19] sm:$0xff] %v1968_v40  ;;  %2098 = vst [vmem:[#allocation19 + $0x10] sm:$0xff] %v1969_v42 }
 0x50d   :  { %2100 = vst [vmem:[#allocation19 + $0x20] sm:$0xff] %v1970_v53  ;;  %2102 = vst [vmem:[#allocation19 + $0x30] sm:$0xff] %v1971_v43  ;;  %v2032_v33 = vrot.slane %v2010_v46, %v3097_v37  ;;  %v2039_v51 = vrot.slane %v2011_v47, %v3097_v37 }
 0x50f   :  { %v2040_v55 = vcombine.low %v2018_v44, %v2032_v33  ;;  %v2041_v56 = vcombine.high %v2018_v44, %v2032_v33  ;;  %v2042_v57 = vcombine.low %v2025_v45, %v2039_v51  ;;  %v2043_v58 = vcombine.high %v2025_v45, %v2039_v51  ;;  %v1804_v59 = vpop.f32.mrb[16].mxu1  ;;  %v1847_v60 = vpop.f32.mrb[16].mxu0 }
 0x510   :  { %v1805_v61 = vadd.f32 %v1804_v59, %v1343_v48  ;;  %v1848_v62 = vadd.f32 %v1847_v60, %v1351_v50  ;;  %v1806_v63 = vpop.f32.mrb[17].mxu1  ;;  %v1849_v0 = vpop.f32.mrb[17].mxu0 }
 0x511   :  { %2104 = vst [vmem:[#allocation19 + $0x40] sm:$0xff] %v2040_v55  ;;  %2106 = vst [vmem:[#allocation19 + $0x50] sm:$0xff] %v2041_v56  ;;  %v1807_v2 = vadd.f32 %v1806_v63, %v1347_v52  ;;  %v1850_v3 = vadd.f32 %v1849_v0, %v1355_v54  ;;  %v1808_v4 = vpop.f32.mrb[18].mxu1  ;;  %v1851_v5 = vpop.f32.mrb[18].mxu0 }
 0x512   :  { %2108 = vst [vmem:[#allocation19 + $0x60] sm:$0xff] %v2042_v57  ;;  %2110 = vst [vmem:[#allocation19 + $0x70] sm:$0xff] %v2043_v58  ;;  %v1860_v6 = vmul.f32 0.5, %v1805_v61  ;;  %v1862_v32 = vmul.f32 0.5, %v1848_v62  ;;  %v1809_v7 = vadd.f32 %v1808_v4, %v1343_v48  ;;  %v1852_v8 = vadd.f32 %v1851_v5, %v1351_v50  ;;  %v1810_v9 = vpop.f32.mrb[19].mxu1  ;;  %v1853_v1 = vpop.f32.mrb[19].mxu0 }
 0x513   :  { %v1861_v10 = vmul.f32 0.5, %v1807_v2  ;;  %v1863_v11 = vmul.f32 0.5, %v1850_v3  ;;  %v1811_v12 = vadd.f32 %v1810_v9, %v1347_v52  ;;  %v1854_v13 = vadd.f32 %v1853_v1, %v1355_v54 }
 0x514   :  { %2578 = vtanh.f32 %v1860_v6  ;;  %v1868_v14 = vmul.f32 0.5, %v1809_v7  ;;  %v1870_v15 = vmul.f32 0.5, %v1852_v8 }
 0x515   :  { %2580 = vtanh.f32 %v1862_v32  ;;  %v1869_v16 = vmul.f32 0.5, %v1811_v12  ;;  %v1871_v17 = vmul.f32 0.5, %v1854_v13 }
 0x516   :  { %2582 = vtanh.f32 %v1861_v10 }
 0x517   :  { %2584 = vtanh.f32 %v1863_v11 }
 0x518   :  { %2586 = vtanh.f32 %v1868_v14 }
 0x519   :  { %2588 = vtanh.f32 %v1870_v15 }
 0x51a   :  { %2590 = vtanh.f32 %v1869_v16 }
 0x51b   :  { %2592 = vtanh.f32 %v1871_v17 }
 0x51e   :  { %v2579_v18 = vpop.eup %2578 }
 0x51f   :  { %v2581_v19 = vpop.eup %2580  ;;  %v1892_v20 = vmul.f32 0.5, %v2579_v18 }
 0x520   :  { %v2583_v21 = vpop.eup %2582  ;;  %v1894_v22 = vmul.f32 0.5, %v2581_v19 }
 0x521   :  { %v2585_v23 = vpop.eup %2584  ;;  %v1908_v24 = vadd.f32 0.5, %v1892_v20  ;;  %v1893_v25 = vmul.f32 0.5, %v2583_v21 }
 0x522   :  { %v2587_v26 = vpop.eup %2586  ;;  %v1910_v27 = vadd.f32 0.5, %v1894_v22  ;;  %v1895_v28 = vmul.f32 0.5, %v2585_v23 }
 0x523   :  { %v2589_v29 = vpop.eup %2588  ;;  %v1909_v30 = vadd.f32 0.5, %v1893_v25  ;;  %v1900_v31 = vmul.f32 0.5, %v2587_v26 }
 0x524   :  { %v2591_v34 = vpop.eup %2590  ;;  %v1911_v35 = vadd.f32 0.5, %v1895_v28  ;;  %v1902_v36 = vmul.f32 0.5, %v2589_v29 }
 0x525   :  { %v2593_v38 = vpop.eup %2592  ;;  %v1972_v39 = vcombine.low %v1908_v24, %v1909_v30  ;;  %v1973_v49 = vcombine.high %v1908_v24, %v1909_v30  ;;  %v1916_v41 = vadd.f32 0.5, %v1900_v31  ;;  %v1901_v40 = vmul.f32 0.5, %v2591_v34 }
 0x526   :  { %v1974_v42 = vcombine.low %v1910_v27, %v1911_v35  ;;  %v1975_v53 = vcombine.high %v1910_v27, %v1911_v35  ;;  %v1903_v43 = vmul.f32 0.5, %v2593_v38  ;;  %v1918_v46 = vadd.f32 0.5, %v1902_v36 }
 0x527   :  { %v1982_v44 = vrot.slane %v1972_v39, %v3097_v37  ;;  %v1989_v45 = vrot.slane %v1973_v49, %v3097_v37  ;;  %v1917_v47 = vadd.f32 0.5, %v1901_v40 }
 0x528   :  { %v1996_v48 = vrot.slane %v1974_v42, %v3097_v37  ;;  %v2003_v50 = vrot.slane %v1975_v53, %v3097_v37  ;;  %v1919_v33 = vadd.f32 0.5, %v1903_v43 }
 0x529   :  { %v2044_v51 = vcombine.low %v1916_v41, %v1917_v47  ;;  %v2045_v52 = vcombine.high %v1916_v41, %v1917_v47 }
 0x52a   :  { %v2004_v54 = vcombine.low %v1982_v44, %v1996_v48  ;;  %v2005_v55 = vcombine.high %v1982_v44, %v1996_v48  ;;  %v2006_v56 = vcombine.low %v1989_v45, %v2003_v50  ;;  %v2007_v57 = vcombine.high %v1989_v45, %v2003_v50 }
 0x52b   :  { %v2054_v58 = vrot.slane %v2044_v51, %v3097_v37  ;;  %v2061_v59 = vrot.slane %v2045_v52, %v3097_v37  ;;  %v2046_v60 = vcombine.low %v1918_v46, %v1919_v33  ;;  %v2047_v61 = vcombine.high %v1918_v46, %v1919_v33 }
 0x52c   :  { %2097 = vst [vmem:[#allocation19 + $0x8] sm:$0xff] %v2004_v54  ;;  %2099 = vst [vmem:[#allocation19 + $0x18] sm:$0xff] %v2005_v55 }
 0x52d   :  { %2101 = vst [vmem:[#allocation19 + $0x28] sm:$0xff] %v2006_v56  ;;  %2103 = vst [vmem:[#allocation19 + $0x38] sm:$0xff] %v2007_v57  ;;  %v2068_v62 = vrot.slane %v2046_v60, %v3097_v37  ;;  %v2075_v63 = vrot.slane %v2047_v61, %v3097_v37 }
 0x52f   :  { %v2076_v0 = vcombine.low %v2054_v58, %v2068_v62  ;;  %v2077_v2 = vcombine.high %v2054_v58, %v2068_v62  ;;  %v2078_v3 = vcombine.low %v2061_v59, %v2075_v63  ;;  %v2079_v4 = vcombine.high %v2061_v59, %v2075_v63 }
 0x531   :  { %2105 = vst [vmem:[#allocation19 + $0x48] sm:$0xff] %v2076_v0  ;;  %2107 = vst [vmem:[#allocation19 + $0x58] sm:$0xff] %v2077_v2 }
 0x532   :  { %2109 = vst [vmem:[#allocation19 + $0x68] sm:$0xff] %v2078_v3  ;;  %2111 = vst [vmem:[#allocation19 + $0x78] sm:$0xff] %v2079_v4 }
 0x533   :  { %2132 = vsyncadd [#allocation4], 1792  ;;  %s2896_s7 = smov [#allocation19]  }
 0x534   :  { %s2133_s19 = sshll.u32 %s2896_s7, 4  ;;  %s2134_s19 = int_to_ptr.vmem [resolvable:$true] %s2133_s19 }
 0x535   :  { %s2814_s20 = scalar_lea.vmem %s2134_s19, 256  ;;  %s2818_s3 = scalar_lea.vmem %s2134_s19, 2048 }
 0x536   :  { %p2815_p10 = scmp.ne.s32.totalorder %s2134_s19, %s2814_s20  ;;  %p2819_p11 = scmp.lt.s32.totalorder %s2134_s19, %s2134_s19 }
 0x537   :  { %p2820_p12 = scmp.lt.s32.totalorder %s2818_s3, %s2814_s20 }
 0x539   :  { %p2821_p13 = por %p2820_p12, %p2819_p11 }
 0x53b   :  { %p2822_p0 = pnand %p2821_p13, %p2815_p10 }
 0x53d   :  { %2825 = shalt.err (!%p2822_p0)
}
 0x53e   :  { %s2826_s14 = scalar_lea.hbm %s3219_s10, 256 }
 0x53f   :  { %p2827_p1 = scmp.ne.s32.totalorder %s3219_s10, %s2826_s14  ;;  %p2830_p2 = scmp.lt.u32.totalorder %s2826_s14, %s3219_s10 }
 0x541   :  { %p2832_p3 = pnand %p2830_p2, %p2827_p1 }
 0x543   :  { %2835 = shalt.err (!%p2832_p3)
}
 0x544   :  { %2139 = dma.vmem_to_hbm [thread:$0]  %s2134_s19, 256, %s3219_s10, [#allocation4], %s2875_s28, %s2875_s28, %s2876_s29  }
 0x545   :  { %2144 = vsyncadd [#allocation21], 224  ;;  %s2897_s0 = smov [#allocation20]  }
 0x546   :  { %s2145_s25 = sshll.u32 %s2897_s0, 4  ;;  %s2146_s25 = int_to_ptr.vmem [resolvable:$true] %s2145_s25 }
 0x547   :  { %s2836_s26 = scalar_lea.vmem %s2146_s25, 32  ;;  %s2840_s27 = scalar_lea.vmem %s2146_s25, 256 }
 0x548   :  { %p2837_p4 = scmp.ne.s32.totalorder %s2146_s25, %s2836_s26  ;;  %p2841_p5 = scmp.lt.s32.totalorder %s2146_s25, %s2146_s25 }
 0x549   :  { %p2842_p6 = scmp.lt.s32.totalorder %s2840_s27, %s2836_s26 }
 0x54b   :  { %p2843_p7 = por %p2842_p6, %p2841_p5 }
 0x54d   :  { %p2844_p8 = pnand %p2843_p7, %p2837_p4 }
 0x54f   :  { %2847 = shalt.err (!%p2844_p8)
}
 0x550   :  { %s2848_s4 = scalar_lea.hbm %s3220_s11, 32 }
 0x551   :  { %p2849_p9 = scmp.ne.s32.totalorder %s3220_s11, %s2848_s4  ;;  %p2852_p10 = scmp.lt.u32.totalorder %s2848_s4, %s3220_s11 }
 0x553   :  { %p2854_p11 = pnand %p2852_p10, %p2849_p9 }
 0x555   :  { %2857 = shalt.err (!%p2854_p11)
}
 0x556   :  { %2151 = dma.vmem_to_hbm [thread:$0]  %s2146_s25, 32, %s3220_s11, [#allocation21], %s2878_s18, %s2878_s18, %s2879_s24  }
 0x557   :  { %2870 = dma.done.wait [#allocation4], 2048  }
 0x558   :  { %2871 = vsyncadd [#allocation4], 4294965248 }
 0x559   :  { %2872 = dma.done.wait [#allocation21], 256  }
 0x55a   :  { %2873 = vsyncadd [#allocation21], 4294967040 }
 0x55b   :  { %2158 = vsyncpa [#allocation3], 1 }
 0x55c   :  { %2159 = vsyncpa [#allocation6], 1 }
 0x55d   :  { %2160 = vsyncpa [#allocation9], 1 }
 0x55e   :  { %2161 = vsyncpa [#allocation12], 1 }
 0x55f   :  { %2162 = vsyncpa [#allocation15], 1 }
 0x560   :  { %2163 = vsyncpa [#allocation18], 1 }
 0x561   :  { %2164 = vsyncpa [#allocation4], 1 }
 0x562   :  { %2165 = vsyncpa [#allocation21], 1 }

</bundles_post_ra>
